<compile_context>
chip_gen: v7x
topology: tpu7x:2x2x1
jax: 0.10.0
libtpu: 0.0.40
codegen_flags: <defaults>
</compile_context>

<pallas_src>
import jax
import jax.numpy as jnp
from jax import lax
from jax.experimental import pallas as pl
from jax.experimental.pallas import tpu as pltpu


def _round_up(x, m):
    return (x + m - 1) // m * m


def _device_defaults():
    """Generation-aware (v_tile, vmem_limit_bytes)."""
    kind = ""
    try:
        kind = jax.devices()[0].device_kind.lower()
    except Exception:
        pass
    if "v7" in kind or "7x" in kind:
        # 64 MiB physical VMEM, 3.2 TB/s HBM: bigger tiles, tighter limit.
        return 2048, 48 * 1024 * 1024
    # v5e / v6e: 128 MiB physical VMEM.
    return 1024, 96 * 1024 * 1024


# ----------------------------------------------------------------------------- #
# Pallas kernel: one decoder step, gridded over (vocab-group, vocab-tile).
# ----------------------------------------------------------------------------- #
def one_step_decoder_kernel(
    xh_ref,       # [B, E+D]      pre-concatenated [emb | h0]
    enc_ref,      # [B, T, D]     encoder output
    h0_ref,       # [B, D]        previous hidden state
    c0_ref,       # [B, D]        previous cell state
    wg_ref,       # [E+2D, 4D]    fused gate weights for x = [emb | h0 | ctx]
    bg_ref,       # [1, 4D]       b_ih + b_hh
    wout_ref,     # [D, TV]       dense weight tile (transposed, V-padded, bf16)
    bout_ref,     # [1, TV]       dense bias tile (f32)
    # outputs
    logits_ref,   # [B, TV]       logits tile
    state_ref,    # [1, B, SP]    packed lane-dense slab: [h1 | c1 | ctx | alpha | pad]
    # scratch
    h1_sc,        # VMEM [B, D]   new hidden state (bf16), resident across vocab tiles
):
    j = pl.program_id(1)   # vocab-tile index within this core's group (sequential)

    # Attention + LSTM cell: computed once per core (inner index 0); the result is kept
    # in per-core VMEM scratch for all of that core's vocab tiles.
    @pl.when(j == 0)
    def _():
        enc = enc_ref[...]                                   # [B, T, D]
        h0 = h0_ref[...]                                     # [B, D]
        c0 = c0_ref[...]
        B, T, D = enc.shape

        # --- dot attention on the MXU: scores[b,t] = <enc[b,t,:], h0[b,:]> -----
        scores = lax.dot_general(
            enc, h0[:, :, None],
            dimension_numbers=(((2,), (1,)), ((0,), (0,))),
            preferred_element_type=jnp.float32)[..., 0]      # [B, T]
        m = jnp.max(scores, axis=-1, keepdims=True)
        p = jnp.exp(scores - m)
        denom = jnp.sum(p, axis=-1, keepdims=True)
        alpha = p * pl.reciprocal(denom, approx=True)        # EUP, off the VALU
        ctx = lax.dot_general(
            alpha[:, None, :], enc,
            dimension_numbers=(((2,), (1,)), ((0,), (0,))),
            preferred_element_type=jnp.float32)[:, 0, :]     # [B, D]

        # --- LSTM cell, single fused gate matmul (PyTorch gate order i,f,g,o) --
        # x = [emb | h0 | ctx]; only ctx is concatenated in-kernel.
        x = jnp.concatenate([xh_ref[...], ctx], axis=-1)     # [B, E+2D]
        gates = (
            jnp.dot(x, wg_ref[...], preferred_element_type=jnp.float32)
            + bg_ref[...]
        )                                                    # [B, 4D]
        i_g = jax.nn.sigmoid(gates[:, 0 * D:1 * D])
        f_g = jax.nn.sigmoid(gates[:, 1 * D:2 * D])
        g_g = jnp.tanh(gates[:, 2 * D:3 * D])
        o_g = jax.nn.sigmoid(gates[:, 3 * D:4 * D])
        c1 = f_g * c0 + i_g * g_g
        h1 = o_g * jnp.tanh(c1)
        h1_sc[...] = h1.astype(h1_sc.dtype)                  # bf16 copy for the dense matmul

        # --- single lane-dense store of all small outputs (f32, exact) ---------
        parts = [h1, c1, ctx, alpha]                         # widths D, D, D, T
        pad_w = state_ref.shape[-1] - (3 * D + T)
        if pad_w > 0:
            parts.append(jnp.zeros((B, pad_w), jnp.float32))
        state_ref[0] = jnp.concatenate(parts, axis=-1)       # [B, SP]

    # --- dense projection: one vocab tile per grid step (pipelined DMA of wout) -----
    logits_ref[...] = (
        jnp.dot(h1_sc[...], wout_ref[...], preferred_element_type=jnp.float32)
        + bout_ref[...]
    )


# ----------------------------------------------------------------------------- #
# One-time weight preparation (hoisted out of the per-step decode path).
# ----------------------------------------------------------------------------- #
def prepare_decoder_params(params, *, v_tile=None, n_core=None, min_inner_tiles=1,
                           weight_dtype=jnp.bfloat16):
    """Fuse/transpose/pad/cast weights once per sequence.

    min_inner_tiles is mainly for testing small vocabularies (forces extra tiles).
    """
    E = params["embedding"].shape[1]
    V, D = params["w_out"].shape

    default_tile, vmem_limit = _device_defaults()
    if v_tile is None:
        v_tile = min(default_tile, _round_up(V, 128))
    n_vt = pl.cdiv(V, v_tile)
    if n_core is None:
        # Leading "parallel" vocab-group axis: uses both TCs on v7x, harmless on 1-TC chips.
        n_core = 2 if n_vt >= 2 else 1
    n_vt = max(n_vt, n_core * min_inner_tiles)
    n_vt = _round_up(n_vt, n_core)
    n_inner = n_vt // n_core
    V_pad = n_vt * v_tile

    # fused gate weights for x = [emb | h0 | ctx]
    w_ih_t = params["w_ih"].T                               # [E+D, 4D], rows: emb then ctx
    wg = jnp.concatenate([w_ih_t[:E], params["w_hh"].T, w_ih_t[E:]],
                         axis=0).astype(jnp.float32)        # [E+2D, 4D]
    bg = (params["b_ih"] + params["b_hh"]).reshape(1, 4 * D).astype(jnp.float32)

    # vocab projection weights: transposed, padded to lane-dense tiles, bf16
    wout = jnp.zeros((D, V_pad), weight_dtype).at[:, :V].set(
        params["w_out"].T.astype(weight_dtype))
    bout = jnp.zeros((1, V_pad), jnp.float32).at[:, :V].set(
        params["b_out"].reshape(1, V).astype(jnp.float32))

    return dict(embedding=params["embedding"], wg=wg, bg=bg, wout=wout, bout=bout,
                E=E, D=D, V=V, V_pad=V_pad, v_tile=v_tile,
                n_core=n_core, n_inner=n_inner, vmem_limit=int(vmem_limit))


# ----------------------------------------------------------------------------- #
# Per-step wrapper (glue: embedding gather, batch pad, output un-packing)
# ----------------------------------------------------------------------------- #
def one_step_decoder(prep, input_to_decoder, encoder_output, state_h, state_c,
                     *, single_buffer=True):
    """
    input_to_decoder : [B, 1] int32
    encoder_output   : [B, T, D] f32
    state_h, state_c : [1, B, D] f32
    returns (logits[B,V], state_h[1,B,D], state_c[1,B,D], alpha[B,T,1], context[B,D])
    """
    B, T, D = encoder_output.shape
    E, V, V_pad = prep["E"], prep["V"], prep["V_pad"]
    v_tile, n_core, n_inner = prep["v_tile"], prep["n_core"], prep["n_inner"]

    # embedding lookup (glue, outside the kernel) + pre-concat [emb | h0]
    emb = prep["embedding"][input_to_decoder[:, 0]]          # [B, E]
    h0 = state_h[0]                                          # [B, D]
    c0 = state_c[0]
    xh = jnp.concatenate([emb, h0], axis=-1)                 # [B, E+D]

    # pad batch to a full sublane group -> unmasked stores, full MXU rows
    B_pad = _round_up(max(B, 8), 8)
    def bpad(a):
        if B_pad == B:
            return a
        return jnp.pad(a, ((0, B_pad - B),) + ((0, 0),) * (a.ndim - 1))
    xh_p, enc_p, h0_p, c0_p = bpad(xh), bpad(encoder_output), bpad(h0), bpad(c0)

    # packed small-output slab width (h1|c1|ctx|alpha, padded to 128 lanes)
    SP = _round_up(3 * D + T, 128)

    # single-buffer the block-invariant inputs (their index maps are constant)
    inv = {"pipeline_mode": pl.Buffered(1)} if single_buffer else {}
    # NOTE: for very large T*D on v7x, enc could instead stay in HBM (memory_space=pl.ANY)
    # and be DMA'd under pl.run_scoped inside the j==0 branch to release its VMEM.

    grid_spec = pltpu.PrefetchScalarGridSpec(
        num_scalar_prefetch=0,
        grid=(n_core, n_inner),
        in_specs=[
            pl.BlockSpec((B_pad, E + D), lambda c, j: (0, 0), **inv),
            pl.BlockSpec((B_pad, T, D), lambda c, j: (0, 0, 0), **inv),
            pl.BlockSpec((B_pad, D), lambda c, j: (0, 0), **inv),
            pl.BlockSpec((B_pad, D), lambda c, j: (0, 0), **inv),
            pl.BlockSpec((E + 2 * D, 4 * D), lambda c, j: (0, 0), **inv),
            pl.BlockSpec((1, 4 * D), lambda c, j: (0, 0), **inv),
            # vocab-tiled weights stay double-buffered so their DMA pipelines with MXU
            pl.BlockSpec((D, v_tile), lambda c, j: (0, c * n_inner + j)),
            pl.BlockSpec((1, v_tile), lambda c, j: (0, c * n_inner + j)),
        ],
        out_specs=(
            pl.BlockSpec((B_pad, v_tile), lambda c, j: (0, c * n_inner + j)),
            pl.BlockSpec((1, B_pad, SP), lambda c, j: (c, 0, 0)),
        ),
        scratch_shapes=[pltpu.VMEM((B_pad, D), jnp.bfloat16)],
    )

    logits_pad, slab = pl.pallas_call(
        one_step_decoder_kernel,
        out_shape=(
            jax.ShapeDtypeStruct((B_pad, V_pad), jnp.float32),
            jax.ShapeDtypeStruct((n_core, B_pad, SP), jnp.float32),
        ),
        grid_spec=grid_spec,
        compiler_params=pltpu.CompilerParams(
            # outer vocab-group axis is parallel (megacore on v7x); inner tile axis is the
            # sequential carry of the per-core h1 scratch.
            dimension_semantics=("parallel", "arbitrary"),
            vmem_limit_bytes=prep["vmem_limit"],
        ),
    )(xh_p, enc_p, h0_p, c0_p, prep["wg"], prep["bg"], prep["wout"], prep["bout"])

    logits = logits_pad[:B, :V]
    s = slab[0, :B]
    h1 = s[:, 0:D]
    c1 = s[:, D:2 * D]
    ctx = s[:, 2 * D:3 * D]
    alpha = s[:, 3 * D:3 * D + T]

    return (
        logits,                       # result_out.squeeze(1)      [B, V]
        h1[None, :, :],               # state_h                    [1, B, D]
        c1[None, :, :],               # state_c                    [1, B, D]
        alpha[:, :, None],            # attention_weights          [B, T, 1]
        ctx,                          # context_vector             [B, D]
    )


# ----------------------------------------------------------------------------- #
# Pure-JAX reference (mirrors the PyTorch forward) for a sanity check
# ----------------------------------------------------------------------------- #
def one_step_decoder_ref(params, ids, enc, state_h, state_c):
    B, T, D = enc.shape
    emb = params["embedding"][ids[:, 0]]
    h0, c0 = state_h[0], state_c[0]

    scores = jnp.einsum("btd,bd->bt", enc, h0)
    alpha = jax.nn.softmax(scores, axis=1)
    ctx = jnp.einsum("bt,btd->bd", alpha, enc)

    x = jnp.concatenate([emb, ctx], axis=-1)
    gates = x @ params["w_ih"].T + params["b_ih"] + h0 @ params["w_hh"].T + params["b_hh"]
    i_g = jax.nn.sigmoid(gates[:, 0 * D:1 * D])
    f_g = jax.nn.sigmoid(gates[:, 1 * D:2 * D])
    g_g = jnp.tanh(gates[:, 2 * D:3 * D])
    o_g = jax.nn.sigmoid(gates[:, 3 * D:4 * D])
    c1 = f_g * c0 + i_g * g_g
    h1 = o_g * jnp.tanh(c1)
    logits = h1 @ params["w_out"].T + params["b_out"]
    return logits, h1[None], c1[None], alpha[:, :, None], ctx


# ----------------------------------------------------------------------------- #
if __name__ == "__main__":
    # small shapes consistent with the module
    B = 2              # batch
    T = 8              # input_length (encoder timesteps)
    D = 32             # dec_units (== encoder feature dim for 'dot' attention)
    E = 16             # embedding_dim
    V = 64             # tar_vocab_size

    key = jax.random.PRNGKey(0)
    ks = jax.random.split(key, 12)

    # deterministic synthetic parameters (nn.Embedding padding_idx=0 -> row 0 zero)
    embedding = 0.1 * jax.random.normal(ks[0], (V, E), jnp.float32)
    embedding = embedding.at[0].set(0.0)
    params = {
        "embedding": embedding,
        "w_ih": 0.1 * jax.random.normal(ks[1], (4 * D, E + D), jnp.float32),
        "w_hh": 0.1 * jax.random.normal(ks[2], (4 * D, D), jnp.float32),
        "b_ih": 0.1 * jax.random.normal(ks[3], (4 * D,), jnp.float32),
        "b_hh": 0.1 * jax.random.normal(ks[4], (4 * D,), jnp.float32),
        "w_out": 0.1 * jax.random.normal(ks[5], (V, D), jnp.float32),
        "b_out": 0.1 * jax.random.normal(ks[6], (V,), jnp.float32),
    }

    # deterministic example inputs
    input_to_decoder = jax.random.randint(ks[7], (B, 1), 0, V, dtype=jnp.int32)
    encoder_output = jax.random.normal(ks[8], (B, T, D), jnp.float32)
    state_h = jax.random.normal(ks[9], (1, B, D), jnp.float32)
    state_c = jax.random.normal(ks[10], (1, B, D), jnp.float32)

    refs = one_step_decoder_ref(params, input_to_decoder, encoder_output, state_h, state_c)

    def run(prep):
        try:
            return jax.block_until_ready(
                one_step_decoder(prep, input_to_decoder, encoder_output,
                                 state_h, state_c, single_buffer=True))
        except Exception:
            # If this JAX version rejects pl.Buffered(1) single-buffering, fall back to the
            # default double-buffered specs (pure perf feature; semantics identical).
            return jax.block_until_ready(
                one_step_decoder(prep, input_to_decoder, encoder_output,
                                 state_h, state_c, single_buffer=False))

    # variant 1: default config (single vocab tile at this tiny V)
    prep1 = prepare_decoder_params(params)
    outs1 = run(prep1)

    # variant 2: force a (2-group x 2-tile) grid to exercise the pipelined vocab loop,
    # the per-core prologue recompute and the scratch carry across tiles.
    prep2 = prepare_decoder_params(params, v_tile=128, n_core=2, min_inner_tiles=2)
    outs2 = run(prep2)

    # tolerances: EUP approx reciprocal in softmax + bf16 vocab weights for logits
    names = ("logits", "state_h", "state_c", "alpha", "ctx")
    tols = {"logits": 2e-2, "state_h": 5e-3, "state_c": 5e-3, "alpha": 5e-3, "ctx": 5e-3}
    for outs in (outs1, outs2):
        for name, o, r in zip(names, outs, refs):
            assert o.shape == r.shape, (name, o.shape, r.shape)
            assert jnp.allclose(o, r, atol=tols[name], rtol=tols[name]), name

    print("KERNEL_OK")
</pallas_src>

<mosaic_0001>
module attributes {stable_mosaic.version = 11 : i64} {
  func.func @one_step_decoder_kernel(%arg0: i32, %arg1: i32, %arg2: memref<8x48xf32, #tpu.memory_space<vmem>>, %arg3: memref<8x8x32xf32, #tpu.memory_space<vmem>>, %arg4: memref<8x32xf32, #tpu.memory_space<vmem>>, %arg5: memref<8x32xf32, #tpu.memory_space<vmem>>, %arg6: memref<80x128xf32, #tpu.memory_space<vmem>>, %arg7: memref<1x128xf32, #tpu.memory_space<vmem>>, %arg8: memref<32x128xbf16, #tpu.memory_space<vmem>>, %arg9: memref<1x128xf32, #tpu.memory_space<vmem>>, %arg10: memref<8x128xf32, #tpu.memory_space<vmem>>, %arg11: memref<1x8x128xf32, #tpu.memory_space<vmem>>, %arg12: memref<8x32xbf16, #tpu.memory_space<vmem>>) attributes {dimension_semantics = [#tpu.dimension_semantics<parallel>, #tpu.dimension_semantics<arbitrary>], iteration_bounds = array<i64: 1, 1>, scalar_prefetch = 0 : i64, scratch_operands = 1 : i64, tpu.core_type = #tpu.core_type<tc>, window_params = [{pipeline_mode = #tpu.pipeline_mode<synchronous>, transform_indices = @transform_0, window_bounds = array<i64: 8, 48>}, {pipeline_mode = #tpu.pipeline_mode<synchronous>, transform_indices = @transform_1, window_bounds = array<i64: 8, 8, 32>}, {pipeline_mode = #tpu.pipeline_mode<synchronous>, transform_indices = @transform_2, window_bounds = array<i64: 8, 32>}, {pipeline_mode = #tpu.pipeline_mode<synchronous>, transform_indices = @transform_3, window_bounds = array<i64: 8, 32>}, {pipeline_mode = #tpu.pipeline_mode<synchronous>, transform_indices = @transform_4, window_bounds = array<i64: 80, 128>}, {pipeline_mode = #tpu.pipeline_mode<synchronous>, transform_indices = @transform_5, window_bounds = array<i64: 1, 128>}, {transform_indices = @transform_6, window_bounds = array<i64: 32, 128>}, {transform_indices = @transform_7, window_bounds = array<i64: 1, 128>}, {transform_indices = @transform_8, window_bounds = array<i64: 8, 128>}, {transform_indices = @transform_9, window_bounds = array<i64: 1, 8, 128>}]} {
    %c0_i32 = arith.constant 0 : i32
    %0 = arith.cmpi eq, %arg1, %c0_i32 : i32
    %1 = arith.extui %0 : i1 to i32
    %c0_i32_0 = arith.constant 0 : i32
    %2 = arith.cmpi ne, %1, %c0_i32_0 : i32
    scf.if %2 {
      %c0_8 = arith.constant 0 : index
      %c0_9 = arith.constant 0 : index
      %c0_10 = arith.constant 0 : index
      %10 = vector.load %arg3[%c0_8, %c0_9, %c0_10] : memref<8x8x32xf32, #tpu.memory_space<vmem>>, vector<8x8x32xf32>
      %c0_11 = arith.constant 0 : index
      %c0_12 = arith.constant 0 : index
      %11 = vector.load %arg4[%c0_11, %c0_12] : memref<8x32xf32, #tpu.memory_space<vmem>>, vector<8x32xf32>
      %c0_13 = arith.constant 0 : index
      %c0_14 = arith.constant 0 : index
      %12 = vector.load %arg5[%c0_13, %c0_14] : memref<8x32xf32, #tpu.memory_space<vmem>>, vector<8x32xf32>
      %13 = vector.shape_cast %11 : vector<8x32xf32> to vector<8x32x1xf32>
      %cst_15 = arith.constant dense<0.000000e+00> : vector<8x8x1xf32>
      %14 = tpu.matmul %10, %13, %cst_15 {dimension_numbers = #tpu.dot_dimension_numbers<[2], [1], [1], [2], [0, 0, 0, 1, 1, 2], [0], [0]>} : vector<8x8x32xf32>, vector<8x32x1xf32>, vector<8x8x1xf32> -> vector<8x8x1xf32>
      %15 = vector.shape_cast %14 : vector<8x8x1xf32> to vector<8x8xf32>
      %cst_16 = arith.constant dense<0xFF800000> : vector<8xf32>
      %16 = vector.multi_reduction <maximumf>, %15, %cst_16 [1] : vector<8x8xf32> to vector<8xf32>
      %17 = vector.shape_cast %16 : vector<8xf32> to vector<8x1xf32>
      %18 = vector.broadcast %17 : vector<8x1xf32> to vector<8x8xf32>
      %19 = arith.subf %15, %18 : vector<8x8xf32>
      %20 = math.exp %19 : vector<8x8xf32>
      %cst_17 = arith.constant dense<0.000000e+00> : vector<8xf32>
      %21 = vector.multi_reduction <add>, %20, %cst_17 [1] : vector<8x8xf32> to vector<8xf32>
      %22 = vector.shape_cast %21 : vector<8xf32> to vector<8x1xf32>
      %23 = tpu.reciprocal %22 {approx = true} : vector<8x1xf32> -> vector<8x1xf32>
      %24 = vector.broadcast %23 : vector<8x1xf32> to vector<8x8xf32>
      %25 = arith.mulf %20, %24 : vector<8x8xf32>
      %26 = vector.shape_cast %25 : vector<8x8xf32> to vector<8x1x8xf32>
      %cst_18 = arith.constant dense<0.000000e+00> : vector<8x1x32xf32>
      %27 = tpu.matmul %26, %10, %cst_18 {dimension_numbers = #tpu.dot_dimension_numbers<[2], [1], [1], [2], [0, 0, 0, 1, 1, 2], [0], [0]>} : vector<8x1x8xf32>, vector<8x8x32xf32>, vector<8x1x32xf32> -> vector<8x1x32xf32>
      %28 = vector.shape_cast %27 : vector<8x1x32xf32> to vector<8x32xf32>
      %c0_19 = arith.constant 0 : index
      %c0_20 = arith.constant 0 : index
      %29 = vector.load %arg2[%c0_19, %c0_20] : memref<8x48xf32, #tpu.memory_space<vmem>>, vector<8x48xf32>
      %30 = tpu.concatenate %29, %28 in 1 : vector<8x48xf32>, vector<8x32xf32> -> vector<8x80xf32>
      %c0_21 = arith.constant 0 : index
      %c0_22 = arith.constant 0 : index
      %31 = vector.load %arg6[%c0_21, %c0_22] : memref<80x128xf32, #tpu.memory_space<vmem>>, vector<80x128xf32>
      %cst_23 = arith.constant dense<0.000000e+00> : vector<8x128xf32>
      %32 = tpu.matmul %30, %31, %cst_23 {dimension_numbers = #tpu.dot_dimension_numbers<[1], [0], [0], [1], [0, 0, 1, 1], [], []>} : vector<8x80xf32>, vector<80x128xf32>, vector<8x128xf32> -> vector<8x128xf32>
      %c0_24 = arith.constant 0 : index
      %c0_25 = arith.constant 0 : index
      %33 = vector.load %arg7[%c0_24, %c0_25] : memref<1x128xf32, #tpu.memory_space<vmem>>, vector<1x128xf32>
      %34 = vector.broadcast %33 : vector<1x128xf32> to vector<8x128xf32>
      %35 = arith.addf %32, %34 : vector<8x128xf32>
      %36 = vector.extract_strided_slice %35 {offsets = [0, 0], sizes = [8, 32], strides = [1, 1]} : vector<8x128xf32> to vector<8x32xf32>
      %37 = arith.negf %36 : vector<8x32xf32>
      %38 = math.exp %37 : vector<8x32xf32>
      %cst_26 = arith.constant 1.000000e+00 : f32
      %39 = vector.broadcast %cst_26 : f32 to vector<8x32xf32>
      %40 = arith.addf %39, %38 : vector<8x32xf32>
      %41 = arith.divf %39, %40 : vector<8x32xf32>
      %42 = vector.extract_strided_slice %35 {offsets = [0, 32], sizes = [8, 32], strides = [1, 1]} : vector<8x128xf32> to vector<8x32xf32>
      %43 = arith.negf %42 : vector<8x32xf32>
      %44 = math.exp %43 : vector<8x32xf32>
      %cst_27 = arith.constant 1.000000e+00 : f32
      %45 = vector.broadcast %cst_27 : f32 to vector<8x32xf32>
      %46 = arith.addf %45, %44 : vector<8x32xf32>
      %47 = arith.divf %45, %46 : vector<8x32xf32>
      %48 = vector.extract_strided_slice %35 {offsets = [0, 64], sizes = [8, 32], strides = [1, 1]} : vector<8x128xf32> to vector<8x32xf32>
      %49 = math.tanh %48 : vector<8x32xf32>
      %50 = vector.extract_strided_slice %35 {offsets = [0, 96], sizes = [8, 32], strides = [1, 1]} : vector<8x128xf32> to vector<8x32xf32>
      %51 = arith.negf %50 : vector<8x32xf32>
      %52 = math.exp %51 : vector<8x32xf32>
      %cst_28 = arith.constant 1.000000e+00 : f32
      %53 = vector.broadcast %cst_28 : f32 to vector<8x32xf32>
      %54 = arith.addf %53, %52 : vector<8x32xf32>
      %55 = arith.divf %53, %54 : vector<8x32xf32>
      %56 = arith.mulf %47, %12 : vector<8x32xf32>
      %57 = arith.mulf %41, %49 : vector<8x32xf32>
      %58 = arith.addf %56, %57 : vector<8x32xf32>
      %59 = math.tanh %58 : vector<8x32xf32>
      %60 = arith.mulf %55, %59 : vector<8x32xf32>
      %61 = arith.truncf %60 : vector<8x32xf32> to vector<8x32xbf16>
      %c0_29 = arith.constant 0 : index
      %c0_30 = arith.constant 0 : index
      %62 = vector.load %arg12[%c0_29, %c0_30] : memref<8x32xbf16, #tpu.memory_space<vmem>>, vector<8x32xbf16>
      tpu.vector_store %arg12[%c0_29, %c0_30], %61 {strides = array<i32>} : memref<8x32xbf16, #tpu.memory_space<vmem>>, vector<8x32xbf16>,
      %cst_31 = arith.constant 0.000000e+00 : f32
      %63 = vector.broadcast %cst_31 : f32 to vector<8x24xf32>
      %64 = tpu.concatenate %60, %58, %28, %25, %63 in 1 : vector<8x32xf32>, vector<8x32xf32>, vector<8x32xf32>, vector<8x8xf32>, vector<8x24xf32> -> vector<8x128xf32>
      %c0_32 = arith.constant 0 : index
      %c0_33 = arith.constant 0 : index
      %c0_34 = arith.constant 0 : index
      %65 = vector.load %arg11[%c0_32, %c0_33, %c0_34] : memref<1x8x128xf32, #tpu.memory_space<vmem>>, vector<1x8x128xf32>
      %66 = vector.shape_cast %65 : vector<1x8x128xf32> to vector<8x128xf32>
      %67 = vector.shape_cast %64 : vector<8x128xf32> to vector<1x8x128xf32>
      tpu.vector_store %arg11[%c0_32, %c0_33, %c0_34], %67 {strides = array<i32>} : memref<1x8x128xf32, #tpu.memory_space<vmem>>, vector<1x8x128xf32>,
    } else {
    }
    %c0 = arith.constant 0 : index
    %c0_1 = arith.constant 0 : index
    %3 = vector.load %arg12[%c0, %c0_1] : memref<8x32xbf16, #tpu.memory_space<vmem>>, vector<8x32xbf16>
    %c0_2 = arith.constant 0 : index
    %c0_3 = arith.constant 0 : index
    %4 = vector.load %arg8[%c0_2, %c0_3] : memref<32x128xbf16, #tpu.memory_space<vmem>>, vector<32x128xbf16>
    %cst = arith.constant dense<0.000000e+00> : vector<8x128xf32>
    %5 = tpu.matmul %3, %4, %cst {dimension_numbers = #tpu.dot_dimension_numbers<[1], [0], [0], [1], [0, 0, 1, 1], [], []>} : vector<8x32xbf16>, vector<32x128xbf16>, vector<8x128xf32> -> vector<8x128xf32>
    %c0_4 = arith.constant 0 : index
    %c0_5 = arith.constant 0 : index
    %6 = vector.load %arg9[%c0_4, %c0_5] : memref<1x128xf32, #tpu.memory_space<vmem>>, vector<1x128xf32>
    %7 = vector.broadcast %6 : vector<1x128xf32> to vector<8x128xf32>
    %8 = arith.addf %5, %7 : vector<8x128xf32>
    %c0_6 = arith.constant 0 : index
    %c0_7 = arith.constant 0 : index
    %9 = vector.load %arg10[%c0_6, %c0_7] : memref<8x128xf32, #tpu.memory_space<vmem>>, vector<8x128xf32>
    tpu.vector_store %arg10[%c0_6, %c0_7], %8 {strides = array<i32>} : memref<8x128xf32, #tpu.memory_space<vmem>>, vector<8x128xf32>,
    return
  }
  func.func @transform_0(%arg0: i32, %arg1: i32) -> (i32, i32) {
    %c0_i32 = arith.constant 0 : i32
    %c0_i32_0 = arith.constant 0 : i32
    %c0_i32_1 = arith.constant 0 : i32
    return %c0_i32, %c0_i32_0 : i32, i32
  }
  func.func @transform_1(%arg0: i32, %arg1: i32) -> (i32, i32, i32) {
    %c0_i32 = arith.constant 0 : i32
    %c0_i32_0 = arith.constant 0 : i32
    %c0_i32_1 = arith.constant 0 : i32
    %c0_i32_2 = arith.constant 0 : i32
    return %c0_i32, %c0_i32_0, %c0_i32_1 : i32, i32, i32
  }
  func.func @transform_2(%arg0: i32, %arg1: i32) -> (i32, i32) {
    %c0_i32 = arith.constant 0 : i32
    %c0_i32_0 = arith.constant 0 : i32
    %c0_i32_1 = arith.constant 0 : i32
    return %c0_i32, %c0_i32_0 : i32, i32
  }
  func.func @transform_3(%arg0: i32, %arg1: i32) -> (i32, i32) {
    %c0_i32 = arith.constant 0 : i32
    %c0_i32_0 = arith.constant 0 : i32
    %c0_i32_1 = arith.constant 0 : i32
    return %c0_i32, %c0_i32_0 : i32, i32
  }
  func.func @transform_4(%arg0: i32, %arg1: i32) -> (i32, i32) {
    %c0_i32 = arith.constant 0 : i32
    %c0_i32_0 = arith.constant 0 : i32
    %c0_i32_1 = arith.constant 0 : i32
    return %c0_i32, %c0_i32_0 : i32, i32
  }
  func.func @transform_5(%arg0: i32, %arg1: i32) -> (i32, i32) {
    %c0_i32 = arith.constant 0 : i32
    %c0_i32_0 = arith.constant 0 : i32
    %c0_i32_1 = arith.constant 0 : i32
    return %c0_i32, %c0_i32_0 : i32, i32
  }
  func.func @transform_6(%arg0: i32, %arg1: i32) -> (i32, i32) {
    %c1_i32 = arith.constant 1 : i32
    %0 = arith.muli %arg0, %c1_i32 : i32
    %1 = arith.addi %0, %arg1 : i32
    %c0_i32 = arith.constant 0 : i32
    %c0_i32_0 = arith.constant 0 : i32
    return %c0_i32, %1 : i32, i32
  }
  func.func @transform_7(%arg0: i32, %arg1: i32) -> (i32, i32) {
    %c1_i32 = arith.constant 1 : i32
    %0 = arith.muli %arg0, %c1_i32 : i32
    %1 = arith.addi %0, %arg1 : i32
    %c0_i32 = arith.constant 0 : i32
    %c0_i32_0 = arith.constant 0 : i32
    return %c0_i32, %1 : i32, i32
  }
  func.func @transform_8(%arg0: i32, %arg1: i32) -> (i32, i32) {
    %c1_i32 = arith.constant 1 : i32
    %0 = arith.muli %arg0, %c1_i32 : i32
    %1 = arith.addi %0, %arg1 : i32
    %c0_i32 = arith.constant 0 : i32
    %c0_i32_0 = arith.constant 0 : i32
    return %c0_i32, %1 : i32, i32
  }
  func.func @transform_9(%arg0: i32, %arg1: i32) -> (i32, i32, i32) {
    %c0_i32 = arith.constant 0 : i32
    %c0_i32_0 = arith.constant 0 : i32
    %c0_i32_1 = arith.constant 0 : i32
    return %arg0, %c0_i32, %c0_i32_0 : i32, i32, i32
  }
}

module attributes {stable_mosaic.version = 11 : i64} {
  func.func @one_step_decoder_kernel(%arg0: i32, %arg1: i32, %arg2: memref<8x48xf32, #tpu.memory_space<vmem>>, %arg3: memref<8x8x32xf32, #tpu.memory_space<vmem>>, %arg4: memref<8x32xf32, #tpu.memory_space<vmem>>, %arg5: memref<8x32xf32, #tpu.memory_space<vmem>>, %arg6: memref<80x128xf32, #tpu.memory_space<vmem>>, %arg7: memref<1x128xf32, #tpu.memory_space<vmem>>, %arg8: memref<32x128xbf16, #tpu.memory_space<vmem>>, %arg9: memref<1x128xf32, #tpu.memory_space<vmem>>, %arg10: memref<8x128xf32, #tpu.memory_space<vmem>>, %arg11: memref<1x8x128xf32, #tpu.memory_space<vmem>>, %arg12: memref<8x32xbf16, #tpu.memory_space<vmem>>) attributes {dimension_semantics = [#tpu.dimension_semantics<parallel>, #tpu.dimension_semantics<arbitrary>], iteration_bounds = array<i64: 1, 1>, scalar_prefetch = 0 : i64, scratch_operands = 1 : i64, tpu.core_type = #tpu.core_type<tc>, window_params = [{pipeline_mode = #tpu.pipeline_mode<synchronous>, transform_indices = @transform_0, window_bounds = array<i64: 8, 48>}, {pipeline_mode = #tpu.pipeline_mode<synchronous>, transform_indices = @transform_1, window_bounds = array<i64: 8, 8, 32>}, {pipeline_mode = #tpu.pipeline_mode<synchronous>, transform_indices = @transform_2, window_bounds = array<i64: 8, 32>}, {pipeline_mode = #tpu.pipeline_mode<synchronous>, transform_indices = @transform_3, window_bounds = array<i64: 8, 32>}, {pipeline_mode = #tpu.pipeline_mode<synchronous>, transform_indices = @transform_4, window_bounds = array<i64: 80, 128>}, {pipeline_mode = #tpu.pipeline_mode<synchronous>, transform_indices = @transform_5, window_bounds = array<i64: 1, 128>}, {transform_indices = @transform_6, window_bounds = array<i64: 32, 128>}, {transform_indices = @transform_7, window_bounds = array<i64: 1, 128>}, {transform_indices = @transform_8, window_bounds = array<i64: 8, 128>}, {transform_indices = @transform_9, window_bounds = array<i64: 1, 8, 128>}]} {
    %c0_i32 = arith.constant 0 : i32
    %0 = arith.cmpi eq, %arg1, %c0_i32 : i32
    %1 = arith.extui %0 : i1 to i32
    %c0_i32_0 = arith.constant 0 : i32
    %2 = arith.cmpi ne, %1, %c0_i32_0 : i32
    scf.if %2 {
      %c0_8 = arith.constant 0 : index
      %c0_9 = arith.constant 0 : index
      %c0_10 = arith.constant 0 : index
      %10 = vector.load %arg3[%c0_8, %c0_9, %c0_10] : memref<8x8x32xf32, #tpu.memory_space<vmem>>, vector<8x8x32xf32>
      %c0_11 = arith.constant 0 : index
      %c0_12 = arith.constant 0 : index
      %11 = vector.load %arg4[%c0_11, %c0_12] : memref<8x32xf32, #tpu.memory_space<vmem>>, vector<8x32xf32>
      %c0_13 = arith.constant 0 : index
      %c0_14 = arith.constant 0 : index
      %12 = vector.load %arg5[%c0_13, %c0_14] : memref<8x32xf32, #tpu.memory_space<vmem>>, vector<8x32xf32>
      %13 = vector.shape_cast %11 : vector<8x32xf32> to vector<8x32x1xf32>
      %cst_15 = arith.constant dense<0.000000e+00> : vector<8x8x1xf32>
      %14 = tpu.matmul %10, %13, %cst_15 {dimension_numbers = #tpu.dot_dimension_numbers<[2], [1], [1], [2], [0, 0, 0, 1, 1, 2], [0], [0]>} : vector<8x8x32xf32>, vector<8x32x1xf32>, vector<8x8x1xf32> -> vector<8x8x1xf32>
      %15 = vector.shape_cast %14 : vector<8x8x1xf32> to vector<8x8xf32>
      %cst_16 = arith.constant dense<0xFF800000> : vector<8xf32>
      %16 = vector.multi_reduction <maximumf>, %15, %cst_16 [1] : vector<8x8xf32> to vector<8xf32>
      %17 = vector.shape_cast %16 : vector<8xf32> to vector<8x1xf32>
      %18 = vector.broadcast %17 : vector<8x1xf32> to vector<8x8xf32>
      %19 = arith.subf %15, %18 : vector<8x8xf32>
      %20 = math.exp %19 : vector<8x8xf32>
      %cst_17 = arith.constant dense<0.000000e+00> : vector<8xf32>
      %21 = vector.multi_reduction <add>, %20, %cst_17 [1] : vector<8x8xf32> to vector<8xf32>
      %22 = vector.shape_cast %21 : vector<8xf32> to vector<8x1xf32>
      %23 = tpu.reciprocal %22 {approx = true} : vector<8x1xf32> -> vector<8x1xf32>
      %24 = vector.broadcast %23 : vector<8x1xf32> to vector<8x8xf32>
      %25 = arith.mulf %20, %24 : vector<8x8xf32>
      %26 = vector.shape_cast %25 : vector<8x8xf32> to vector<8x1x8xf32>
      %cst_18 = arith.constant dense<0.000000e+00> : vector<8x1x32xf32>
      %27 = tpu.matmul %26, %10, %cst_18 {dimension_numbers = #tpu.dot_dimension_numbers<[2], [1], [1], [2], [0, 0, 0, 1, 1, 2], [0], [0]>} : vector<8x1x8xf32>, vector<8x8x32xf32>, vector<8x1x32xf32> -> vector<8x1x32xf32>
      %28 = vector.shape_cast %27 : vector<8x1x32xf32> to vector<8x32xf32>
      %c0_19 = arith.constant 0 : index
      %c0_20 = arith.constant 0 : index
      %29 = vector.load %arg2[%c0_19, %c0_20] : memref<8x48xf32, #tpu.memory_space<vmem>>, vector<8x48xf32>
      %30 = tpu.concatenate %29, %28 in 1 : vector<8x48xf32>, vector<8x32xf32> -> vector<8x80xf32>
      %c0_21 = arith.constant 0 : index
      %c0_22 = arith.constant 0 : index
      %31 = vector.load %arg6[%c0_21, %c0_22] : memref<80x128xf32, #tpu.memory_space<vmem>>, vector<80x128xf32>
      %cst_23 = arith.constant dense<0.000000e+00> : vector<8x128xf32>
      %32 = tpu.matmul %30, %31, %cst_23 {dimension_numbers = #tpu.dot_dimension_numbers<[1], [0], [0], [1], [0, 0, 1, 1], [], []>} : vector<8x80xf32>, vector<80x128xf32>, vector<8x128xf32> -> vector<8x128xf32>
      %c0_24 = arith.constant 0 : index
      %c0_25 = arith.constant 0 : index
      %33 = vector.load %arg7[%c0_24, %c0_25] : memref<1x128xf32, #tpu.memory_space<vmem>>, vector<1x128xf32>
      %34 = vector.broadcast %33 : vector<1x128xf32> to vector<8x128xf32>
      %35 = arith.addf %32, %34 : vector<8x128xf32>
      %36 = vector.extract_strided_slice %35 {offsets = [0, 0], sizes = [8, 32], strides = [1, 1]} : vector<8x128xf32> to vector<8x32xf32>
      %37 = arith.negf %36 : vector<8x32xf32>
      %38 = math.exp %37 : vector<8x32xf32>
      %cst_26 = arith.constant 1.000000e+00 : f32
      %39 = vector.broadcast %cst_26 : f32 to vector<8x32xf32>
      %40 = arith.addf %39, %38 : vector<8x32xf32>
      %41 = arith.divf %39, %40 : vector<8x32xf32>
      %42 = vector.extract_strided_slice %35 {offsets = [0, 32], sizes = [8, 32], strides = [1, 1]} : vector<8x128xf32> to vector<8x32xf32>
      %43 = arith.negf %42 : vector<8x32xf32>
      %44 = math.exp %43 : vector<8x32xf32>
      %cst_27 = arith.constant 1.000000e+00 : f32
      %45 = vector.broadcast %cst_27 : f32 to vector<8x32xf32>
      %46 = arith.addf %45, %44 : vector<8x32xf32>
      %47 = arith.divf %45, %46 : vector<8x32xf32>
      %48 = vector.extract_strided_slice %35 {offsets = [0, 64], sizes = [8, 32], strides = [1, 1]} : vector<8x128xf32> to vector<8x32xf32>
      %49 = math.tanh %48 : vector<8x32xf32>
      %50 = vector.extract_strided_slice %35 {offsets = [0, 96], sizes = [8, 32], strides = [1, 1]} : vector<8x128xf32> to vector<8x32xf32>
      %51 = arith.negf %50 : vector<8x32xf32>
      %52 = math.exp %51 : vector<8x32xf32>
      %cst_28 = arith.constant 1.000000e+00 : f32
      %53 = vector.broadcast %cst_28 : f32 to vector<8x32xf32>
      %54 = arith.addf %53, %52 : vector<8x32xf32>
      %55 = arith.divf %53, %54 : vector<8x32xf32>
      %56 = arith.mulf %47, %12 : vector<8x32xf32>
      %57 = arith.mulf %41, %49 : vector<8x32xf32>
      %58 = arith.addf %56, %57 : vector<8x32xf32>
      %59 = math.tanh %58 : vector<8x32xf32>
      %60 = arith.mulf %55, %59 : vector<8x32xf32>
      %61 = arith.truncf %60 : vector<8x32xf32> to vector<8x32xbf16>
      %c0_29 = arith.constant 0 : index
      %c0_30 = arith.constant 0 : index
      %62 = vector.load %arg12[%c0_29, %c0_30] : memref<8x32xbf16, #tpu.memory_space<vmem>>, vector<8x32xbf16>
      tpu.vector_store %arg12[%c0_29, %c0_30], %61 {strides = array<i32>} : memref<8x32xbf16, #tpu.memory_space<vmem>>, vector<8x32xbf16>,
      %cst_31 = arith.constant 0.000000e+00 : f32
      %63 = vector.broadcast %cst_31 : f32 to vector<8x24xf32>
      %64 = tpu.concatenate %60, %58, %28, %25, %63 in 1 : vector<8x32xf32>, vector<8x32xf32>, vector<8x32xf32>, vector<8x8xf32>, vector<8x24xf32> -> vector<8x128xf32>
      %c0_32 = arith.constant 0 : index
      %c0_33 = arith.constant 0 : index
      %c0_34 = arith.constant 0 : index
      %65 = vector.load %arg11[%c0_32, %c0_33, %c0_34] : memref<1x8x128xf32, #tpu.memory_space<vmem>>, vector<1x8x128xf32>
      %66 = vector.shape_cast %65 : vector<1x8x128xf32> to vector<8x128xf32>
      %67 = vector.shape_cast %64 : vector<8x128xf32> to vector<1x8x128xf32>
      tpu.vector_store %arg11[%c0_32, %c0_33, %c0_34], %67 {strides = array<i32>} : memref<1x8x128xf32, #tpu.memory_space<vmem>>, vector<1x8x128xf32>,
    } else {
    }
    %c0 = arith.constant 0 : index
    %c0_1 = arith.constant 0 : index
    %3 = vector.load %arg12[%c0, %c0_1] : memref<8x32xbf16, #tpu.memory_space<vmem>>, vector<8x32xbf16>
    %c0_2 = arith.constant 0 : index
    %c0_3 = arith.constant 0 : index
    %4 = vector.load %arg8[%c0_2, %c0_3] : memref<32x128xbf16, #tpu.memory_space<vmem>>, vector<32x128xbf16>
    %cst = arith.constant dense<0.000000e+00> : vector<8x128xf32>
    %5 = tpu.matmul %3, %4, %cst {dimension_numbers = #tpu.dot_dimension_numbers<[1], [0], [0], [1], [0, 0, 1, 1], [], []>} : vector<8x32xbf16>, vector<32x128xbf16>, vector<8x128xf32> -> vector<8x128xf32>
    %c0_4 = arith.constant 0 : index
    %c0_5 = arith.constant 0 : index
    %6 = vector.load %arg9[%c0_4, %c0_5] : memref<1x128xf32, #tpu.memory_space<vmem>>, vector<1x128xf32>
    %7 = vector.broadcast %6 : vector<1x128xf32> to vector<8x128xf32>
    %8 = arith.addf %5, %7 : vector<8x128xf32>
    %c0_6 = arith.constant 0 : index
    %c0_7 = arith.constant 0 : index
    %9 = vector.load %arg10[%c0_6, %c0_7] : memref<8x128xf32, #tpu.memory_space<vmem>>, vector<8x128xf32>
    tpu.vector_store %arg10[%c0_6, %c0_7], %8 {strides = array<i32>} : memref<8x128xf32, #tpu.memory_space<vmem>>, vector<8x128xf32>,
    return
  }
  func.func @transform_0(%arg0: i32, %arg1: i32) -> (i32, i32) {
    %c0_i32 = arith.constant 0 : i32
    %c0_i32_0 = arith.constant 0 : i32
    %c0_i32_1 = arith.constant 0 : i32
    return %c0_i32, %c0_i32_0 : i32, i32
  }
  func.func @transform_1(%arg0: i32, %arg1: i32) -> (i32, i32, i32) {
    %c0_i32 = arith.constant 0 : i32
    %c0_i32_0 = arith.constant 0 : i32
    %c0_i32_1 = arith.constant 0 : i32
    %c0_i32_2 = arith.constant 0 : i32
    return %c0_i32, %c0_i32_0, %c0_i32_1 : i32, i32, i32
  }
  func.func @transform_2(%arg0: i32, %arg1: i32) -> (i32, i32) {
    %c0_i32 = arith.constant 0 : i32
    %c0_i32_0 = arith.constant 0 : i32
    %c0_i32_1 = arith.constant 0 : i32
    return %c0_i32, %c0_i32_0 : i32, i32
  }
  func.func @transform_3(%arg0: i32, %arg1: i32) -> (i32, i32) {
    %c0_i32 = arith.constant 0 : i32
    %c0_i32_0 = arith.constant 0 : i32
    %c0_i32_1 = arith.constant 0 : i32
    return %c0_i32, %c0_i32_0 : i32, i32
  }
  func.func @transform_4(%arg0: i32, %arg1: i32) -> (i32, i32) {
    %c0_i32 = arith.constant 0 : i32
    %c0_i32_0 = arith.constant 0 : i32
    %c0_i32_1 = arith.constant 0 : i32
    return %c0_i32, %c0_i32_0 : i32, i32
  }
  func.func @transform_5(%arg0: i32, %arg1: i32) -> (i32, i32) {
    %c0_i32 = arith.constant 0 : i32
    %c0_i32_0 = arith.constant 0 : i32
    %c0_i32_1 = arith.constant 0 : i32
    return %c0_i32, %c0_i32_0 : i32, i32
  }
  func.func @transform_6(%arg0: i32, %arg1: i32) -> (i32, i32) {
    %c1_i32 = arith.constant 1 : i32
    %0 = arith.muli %arg0, %c1_i32 : i32
    %1 = arith.addi %0, %arg1 : i32
    %c0_i32 = arith.constant 0 : i32
    %c0_i32_0 = arith.constant 0 : i32
    return %c0_i32, %1 : i32, i32
  }
  func.func @transform_7(%arg0: i32, %arg1: i32) -> (i32, i32) {
    %c1_i32 = arith.constant 1 : i32
    %0 = arith.muli %arg0, %c1_i32 : i32
    %1 = arith.addi %0, %arg1 : i32
    %c0_i32 = arith.constant 0 : i32
    %c0_i32_0 = arith.constant 0 : i32
    return %c0_i32, %1 : i32, i32
  }
  func.func @transform_8(%arg0: i32, %arg1: i32) -> (i32, i32) {
    %c1_i32 = arith.constant 1 : i32
    %0 = arith.muli %arg0, %c1_i32 : i32
    %1 = arith.addi %0, %arg1 : i32
    %c0_i32 = arith.constant 0 : i32
    %c0_i32_0 = arith.constant 0 : i32
    return %c0_i32, %1 : i32, i32
  }
  func.func @transform_9(%arg0: i32, %arg1: i32) -> (i32, i32, i32) {
    %c0_i32 = arith.constant 0 : i32
    %c0_i32_0 = arith.constant 0 : i32
    %c0_i32_1 = arith.constant 0 : i32
    return %arg0, %c0_i32, %c0_i32_0 : i32, i32, i32
  }
}

</mosaic_0001>

<bundles_post_ra>
// kernel: tpu_custom_call.1
= control target key start
LH: loop header
LB: loop body
LE: loop exit
PB: predicated region body
PF: predicated region fallthrough
CT: control target
= control target key end

     0   :  { %15 = vsyncpa [#allocation4], 0  ;;  %s3191_s0 = inlined_call_operand.hbm [shape: f32[8,48], index: 0, kind: input, shape index: {}]   ;;  %s3192_s1 = inlined_call_operand.hbm [shape: f32[8,8,32], index: 1, kind: input, shape index: {}]   ;;  %s3193_s2 = inlined_call_operand.hbm [shape: f32[8,32], index: 2, kind: input, shape index: {}]   ;;  %s3194_s3 = inlined_call_operand.hbm [shape: f32[8,32], index: 3, kind: input, shape index: {}]   ;;  %s3195_s4 = inlined_call_operand.hbm [shape: f32[80,128], index: 4, kind: input, shape index: {}]   ;;  %s3196_s5 = inlined_call_operand.hbm [shape: f32[1,128], index: 5, kind: input, shape index: {}]   ;;  %s3197_s6 = inlined_call_operand.hbm [shape: bf16[32,128], index: 6, kind: input, shape index: {}]   ;;  %s3198_s7 = inlined_call_operand.hbm [shape: f32[1,128], index: 7, kind: input, shape index: {}]   ;;  %s3199_s8 = inlined_call_operand.hbm [shape: f32[8,128], index: 8, kind: output, shape index: {0}]   ;;  %s3200_s9 = inlined_call_operand.hbm [shape: f32[1,8,128], index: 9, kind: output, shape index: {1}]  }
   0x1   :  { %16 = vsyncpa [#allocation7], 0 }
   0x2   :  { %17 = vsyncpa [#allocation10], 0 }
   0x3   :  { %18 = vsyncpa [#allocation13], 0 }
   0x4   :  { %19 = vsyncpa [#allocation16], 0 }
   0x5   :  { %20 = vsyncpa [#allocation5], 0 }
   0x6   :  { %21 = vsyncpa [#allocation19], 0  ;;  %s2726_s30 = smov [#allocation6]   ;;  %s2492_s13 = scalar_lea.hbm %s3192_s1, 1024 }
   0x7   :  { %s37_s10 = sshll.u32 %s2726_s30, 4  ;;  %p2493_p0 = scmp.ne.s32.totalorder %s3192_s1, %s2492_s13  ;;  %s38_s10 = int_to_ptr.vmem [resolvable:$true] %s37_s10 }
   0x8   :  { %p2496_p1 = scmp.lt.u32.totalorder %s2492_s13, %s3192_s1 }
   0xa   :  { %p2498_p2 = pnand %p2496_p1, %p2493_p0 }
   0xc   :  { %2501 = shalt.err (!%p2498_p2)
}
   0xd   :  { %s2502_s18 = scalar_lea.vmem %s38_s10, 1024  ;;  %p2507_p4 = scmp.lt.s32.totalorder %s38_s10, %s38_s10 }
   0xe   :  { %p2503_p3 = scmp.ne.s32.totalorder %s38_s10, %s2502_s18  ;;  %p2508_p5 = scmp.lt.s32.totalorder %s2502_s18, %s2502_s18 }
  0x10   :  { %p2509_p6 = por %p2508_p5, %p2507_p4 }
  0x12   :  { %p2510_p7 = pnand %p2509_p6, %p2503_p3 }
  0x14   :  { %2513 = shalt.err (!%p2510_p7)
}
  0x15   :  { %s2727_s19 = smov 128   ;;  %s2728_s20 = smov 8  }
  0x16   :  { %43 = dma.hbm_to_vmem [thread:$0]  %s3192_s1, 1024, %s38_s10, [#allocation7], %s2727_s19, %s2727_s19, %s2728_s20  }
  0x17   :  { %s2729_s23 = smov [#allocation9]   ;;  %s2730_s25 = smov [#allocation12]  }
  0x18   :  { %s60_s24 = sshll.u32 %s2729_s23, 4  ;;  %s82_s26 = sshll.u32 %s2730_s25, 4  ;;  %s61_s24 = int_to_ptr.vmem [resolvable:$true] %s60_s24  ;;  %s83_s26 = int_to_ptr.vmem [resolvable:$true] %s82_s26 }
  0x19   :  { %s2514_s29 = scalar_lea.hbm %s3194_s3, 128 }
  0x1a   :  { %p2515_p8 = scmp.ne.s32.totalorder %s3194_s3, %s2514_s29  ;;  %p2518_p9 = scmp.lt.u32.totalorder %s2514_s29, %s3194_s3 }
  0x1c   :  { %p2520_p10 = pnand %p2518_p9, %p2515_p8 }
  0x1e   :  { %2523 = shalt.err (!%p2520_p10)
}
  0x1f   :  { %s2524_s1 = scalar_lea.vmem %s61_s24, 128  ;;  %p2529_p12 = scmp.lt.s32.totalorder %s61_s24, %s61_s24 }
  0x20   :  { %p2525_p11 = scmp.ne.s32.totalorder %s61_s24, %s2524_s1  ;;  %p2530_p13 = scmp.lt.s32.totalorder %s2524_s1, %s2524_s1 }
  0x22   :  { %p2531_p0 = por %p2530_p13, %p2529_p12 }
  0x24   :  { %p2532_p1 = pnand %p2531_p0, %p2525_p11 }
  0x26   :  { %2535 = shalt.err (!%p2532_p1)
}
  0x27   :  { %63 = dma.hbm_to_vmem [thread:$0]  %s3194_s3, 128, %s61_s24, [#allocation10]  }
  0x28   :  { %s2536_s17 = scalar_lea.hbm %s3196_s5, 16 }
  0x29   :  { %p2537_p2 = scmp.ne.s32.totalorder %s3196_s5, %s2536_s17  ;;  %p2540_p3 = scmp.lt.u32.totalorder %s2536_s17, %s3196_s5 }
  0x2b   :  { %p2542_p4 = pnand %p2540_p3, %p2537_p2 }
  0x2d   :  { %2545 = shalt.err (!%p2542_p4)
}
  0x2e   :  { %s2546_s25 = scalar_lea.vmem %s83_s26, 16  ;;  %s2550_s27 = scalar_lea.vmem %s83_s26, 32 }
  0x2f   :  { %p2547_p5 = scmp.ne.s32.totalorder %s83_s26, %s2546_s25  ;;  %p2551_p6 = scmp.lt.s32.totalorder %s83_s26, %s83_s26 }
  0x30   :  { %p2552_p7 = scmp.lt.s32.totalorder %s2550_s27, %s2546_s25 }
  0x32   :  { %p2553_p8 = por %p2552_p7, %p2551_p6 }
  0x34   :  { %p2554_p9 = pnand %p2553_p8, %p2547_p5 }
  0x36   :  { %2557 = shalt.err (!%p2554_p9)
}
  0x37   :  { %85 = dma.hbm_to_vmem [thread:$0]  %s3196_s5, 16, %s83_s26, [#allocation13]  }
  0x38   :  { %s2731_s28 = smov [#allocation3]   ;;  %s2732_s30 = smov [#allocation8]  }
  0x39   :  { %s28_s29 = sshll.u32 %s2731_s28, 4  ;;  %s50_s11 = sshll.u32 %s2732_s30, 4  ;;  %s29_s29 = int_to_ptr.vmem [resolvable:$true] %s28_s29  ;;  %s51_s11 = int_to_ptr.vmem [resolvable:$true] %s50_s11 }
  0x3a   :  { %s2558_s1 = scalar_lea.hbm %s3191_s0, 128 }
  0x3b   :  { %p2559_p10 = scmp.ne.s32.totalorder %s3191_s0, %s2558_s1  ;;  %p2562_p11 = scmp.lt.u32.totalorder %s2558_s1, %s3191_s0 }
  0x3d   :  { %p2564_p12 = pnand %p2562_p11, %p2559_p10 }
  0x3f   :  { %2567 = shalt.err (!%p2564_p12)
}
  0x40   :  { %s2568_s5 = scalar_lea.vmem %s29_s29, 128  ;;  %p2573_p0 = scmp.lt.s32.totalorder %s29_s29, %s29_s29 }
  0x41   :  { %p2569_p13 = scmp.ne.s32.totalorder %s29_s29, %s2568_s5  ;;  %p2574_p1 = scmp.lt.s32.totalorder %s2568_s5, %s2568_s5 }
  0x43   :  { %p2575_p2 = por %p2574_p1, %p2573_p0 }
  0x45   :  { %p2576_p3 = pnand %p2575_p2, %p2569_p13 }
  0x47   :  { %2579 = shalt.err (!%p2576_p3)
}
  0x48   :  { %31 = dma.hbm_to_vmem [thread:$0]  %s3191_s0, 128, %s29_s29, [#allocation4]  }
  0x49   :  { %s2580_s22 = scalar_lea.hbm %s3193_s2, 128 }
  0x4a   :  { %p2581_p4 = scmp.ne.s32.totalorder %s3193_s2, %s2580_s22  ;;  %p2584_p5 = scmp.lt.u32.totalorder %s2580_s22, %s3193_s2 }
  0x4c   :  { %p2586_p6 = pnand %p2584_p5, %p2581_p4 }
  0x4e   :  { %2589 = shalt.err (!%p2586_p6)
}
  0x4f   :  { %s2590_s24 = scalar_lea.vmem %s51_s11, 128  ;;  %p2595_p8 = scmp.lt.s32.totalorder %s51_s11, %s51_s11 }
  0x50   :  { %p2591_p7 = scmp.ne.s32.totalorder %s51_s11, %s2590_s24  ;;  %p2596_p9 = scmp.lt.s32.totalorder %s2590_s24, %s2590_s24 }
  0x52   :  { %p2597_p10 = por %p2596_p9, %p2595_p8 }
  0x54   :  { %p2598_p11 = pnand %p2597_p10, %p2591_p7 }
  0x56   :  { %2601 = shalt.err (!%p2598_p11)
}
  0x57   :  { %53 = dma.hbm_to_vmem [thread:$0]  %s3193_s2, 128, %s51_s11, [#allocation7]  }
  0x58   :  { %s2733_s29 = smov [#allocation11]   ;;  %s2734_s12 = smov [#allocation14]  }
  0x59   :  { %s69_s30 = sshll.u32 %s2733_s29, 4  ;;  %s94_s13 = sshll.u32 %s2734_s12, 4  ;;  %s70_s30 = int_to_ptr.vmem [resolvable:$true] %s69_s30  ;;  %s95_s13 = int_to_ptr.vmem [resolvable:$true] %s94_s13 }
  0x5a   :  { %s2602_s14 = scalar_lea.hbm %s3195_s4, 1280 }
  0x5b   :  { %p2603_p12 = scmp.ne.s32.totalorder %s3195_s4, %s2602_s14  ;;  %p2606_p13 = scmp.lt.u32.totalorder %s2602_s14, %s3195_s4 }
  0x5d   :  { %p2608_p0 = pnand %p2606_p13, %p2603_p12 }
  0x5f   :  { %2611 = shalt.err (!%p2608_p0)
}
  0x60   :  { %s2612_s2 = scalar_lea.vmem %s70_s30, 1280  ;;  %p2617_p2 = scmp.lt.s32.totalorder %s70_s30, %s70_s30 }
  0x61   :  { %p2613_p1 = scmp.ne.s32.totalorder %s70_s30, %s2612_s2  ;;  %p2618_p3 = scmp.lt.s32.totalorder %s2612_s2, %s2612_s2 }
  0x63   :  { %p2619_p4 = por %p2618_p3, %p2617_p2 }
  0x65   :  { %p2620_p5 = pnand %p2619_p4, %p2613_p1 }
  0x67   :  { %2623 = shalt.err (!%p2620_p5)
}
  0x68   :  { %75 = dma.hbm_to_vmem [thread:$0]  %s3195_s4, 1280, %s70_s30, [#allocation10], %s2727_s19, %s2727_s19, %s2728_s20  }
  0x69   :  { %s2624_s22 = scalar_lea.hbm %s3197_s6, 256 }
  0x6a   :  { %p2625_p6 = scmp.ne.s32.totalorder %s3197_s6, %s2624_s22  ;;  %p2628_p7 = scmp.lt.u32.totalorder %s2624_s22, %s3197_s6 }
  0x6c   :  { %p2630_p8 = pnand %p2628_p7, %p2625_p6 }
  0x6e   :  { %2633 = shalt.err (!%p2630_p8)
}
  0x6f   :  { %s2634_s24 = scalar_lea.vmem %s95_s13, 256  ;;  %p2639_p10 = scmp.lt.s32.totalorder %s95_s13, %s95_s13 }
  0x70   :  { %p2635_p9 = scmp.ne.s32.totalorder %s95_s13, %s2634_s24  ;;  %p2640_p11 = scmp.lt.s32.totalorder %s2634_s24, %s2634_s24 }
  0x72   :  { %p2641_p12 = por %p2640_p11, %p2639_p10 }
  0x74   :  { %p2642_p13 = pnand %p2641_p12, %p2635_p9 }
  0x76   :  { %2645 = shalt.err (!%p2642_p13)
}
  0x77   :  { %s2735_s4 = smov 64   ;;  %s2736_s19 = smov 4  }
  0x78   :  { %100 = dma.hbm_to_vmem [thread:$0]  %s3197_s6, 256, %s95_s13, [#allocation13], %s2735_s4, %s2735_s4, %s2736_s19  }
  0x79   :  { %s2737_s28 = smov [#allocation15]   ;;  %s2646_s1 = scalar_lea.hbm %s3198_s7, 16 }
  0x7a   :  { %s110_s29 = sshll.u32 %s2737_s28, 4  ;;  %p2647_p0 = scmp.ne.s32.totalorder %s3198_s7, %s2646_s1  ;;  %s111_s29 = int_to_ptr.vmem [resolvable:$true] %s110_s29 }
  0x7b   :  { %p2650_p1 = scmp.lt.u32.totalorder %s2646_s1, %s3198_s7 }
  0x7d   :  { %p2652_p2 = pnand %p2650_p1, %p2647_p0 }
  0x7f   :  { %2655 = shalt.err (!%p2652_p2)
}
  0x80   :  { %s2656_s5 = scalar_lea.vmem %s111_s29, 16  ;;  %s2660_s6 = scalar_lea.vmem %s111_s29, 32 }
  0x81   :  { %p2657_p3 = scmp.ne.s32.totalorder %s111_s29, %s2656_s5  ;;  %p2661_p4 = scmp.lt.s32.totalorder %s111_s29, %s111_s29 }
  0x82   :  { %p2662_p5 = scmp.lt.s32.totalorder %s2660_s6, %s2656_s5 }
  0x84   :  { %p2663_p6 = por %p2662_p5, %p2661_p4 }
  0x86   :  { %p2664_p7 = pnand %p2663_p6, %p2657_p3 }
  0x88   :  { %2667 = shalt.err (!%p2664_p7)
}
  0x89   :  { %113 = dma.hbm_to_vmem [thread:$0]  %s3198_s7, 16, %s111_s29, [#allocation16]  }
  0x8a   :  { %2712 = dma.done.wait [#allocation4], 128  }
  0x8b   :  { %2713 = vsyncadd [#allocation4], 4294967168 }
  0x8c   :  { %2714 = dma.done.wait [#allocation7], 1152  }
  0x8d   :  { %2715 = vsyncadd [#allocation7], 4294966144 }
  0x8e   :  { %2716 = dma.done.wait [#allocation10], 1408  }
  0x8f   :  { %2717 = vsyncadd [#allocation10], 4294965888 }
  0x90   :  { %2718 = dma.done.wait [#allocation13], 272  }
  0x91   :  { %2719 = vsyncadd [#allocation13], 4294967024 }
  0x92   :  { %2720 = dma.done.wait [#allocation16], 16  }
  0x93   :  { %2721 = vsyncadd [#allocation16], 4294967280  ;;  %v156_v0 = vlaneseq  ;;  %v2738_v2 = vmov 0.0|0.0   ;;  %v154_v5 = vld [vmem:[#allocation8] sm:$0xff]  ;;  %vm2739_vm0 = vmmov 0   ;;  %v2740_v8 = vmov 0.0  }
  0x94   :  { %2379 = vmatprep.subr.bf16.mxu0 %v2738_v2  ;;  %2385 = vmatprep.subr.bf16.mxu1 %v2738_v2  ;;  %v2741_v21 = vmov 0   ;;  %v2943_v31 = vld [vmem:[#allocation6] sm:$0xff]  ;;  %vm308_vm1 = vcmask 261120   ;;  %v2948_v35 = vld [vmem:[#allocation6 + $0x8] sm:$0xff]  ;;  %v148_v45 = vld [vmem:[#allocation6 + $0x10] sm:$0xff]  ;;  %vm959_vm2 = vcmask 1041409  }
  0x95   :  { %v2901_v1 = vshrl.u32 %v156_v0, 7  ;;  %2228 = vmatprep.mubr.msk.f32.mxu0 %vm2739_vm0, %v2740_v8  ;;  %2239 = vmatprep.mubr.msk.f32.mxu1 %vm2739_vm0, %v2740_v8  ;;  %v2961_v49 = vld [vmem:[#allocation6 + $0x18] sm:$0xff]  ;;  %v2972_v59 = vld [vmem:[#allocation6 + $0x20] sm:$0xff]  ;;  %v2977_v63 = vld [vmem:[#allocation6 + $0x28] sm:$0xff]  ;;  %vm961_vm3 = vcmask 1042434   ;;  %vm963_vm4 = vcmask 1043459  }
  0x96   :  { %2463 = vset.pattern.permute.xlu1 %v2741_v21  ;;  %2462 = vset.pattern.permute.xlu0 %v2741_v21  ;;  %v2988_v21 = vld [vmem:[#allocation6 + $0x30] sm:$0xff]  ;;  %vm965_vm5 = vcmask 1044484   ;;  %vm967_vm6 = vcmask 1045509   ;;  %vm969_vm7 = vcmask 1046534   ;;  %vm971_vm8 = vcmask 1047559   ;;  %s2742_s7 = smov 48  }
  0x97   :  { %v2906_v3 = vsub.s32 1, %v2901_v1  ;;  %v2909_v4 = vsub.s32 0, %v2901_v1  ;;  %v2918_v9 = vsub.s32 2, %v2901_v1  ;;  %v2922_v11 = vsub.s32 3, %v2901_v1  ;;  %s2743_s2 = smov 32   ;;  %s2744_s11 = smov [#allocation18]  }
  0x98   :  { %v2926_v13 = vsub.s32 4, %v2901_v1  ;;  %v2930_v15 = vsub.s32 5, %v2901_v1  ;;  %v2934_v17 = vsub.s32 6, %v2901_v1  ;;  %v2938_v19 = vsub.s32 7, %v2901_v1  ;;  %s2108_s17 = sshll.u32 %s2744_s11, 4  ;;  %s2109_s17 = int_to_ptr.vmem [resolvable:$true] %s2108_s17 }
  0x99   :  { %v178_v6 = vrot.slane %v154_v5, %v2906_v3  ;;  %v159_v7 = vrot.slane %v154_v5, %v2909_v4  ;;  %v197_v10 = vrot.slane %v154_v5, %v2918_v9  ;;  %v216_v12 = vrot.slane %v154_v5, %v2922_v11  ;;  %s2668_s18 = scalar_lea.vmem %s2109_s17, 128  ;;  %p2673_p9 = scmp.lt.s32.totalorder %s2109_s17, %s2109_s17 }
  0x9a   :  { %v235_v14 = vrot.slane %v154_v5, %v2926_v13  ;;  %v254_v16 = vrot.slane %v154_v5, %v2930_v15  ;;  %v273_v18 = vrot.slane %v154_v5, %v2934_v17  ;;  %v292_v20 = vrot.slane %v154_v5, %v2938_v19  ;;  %p2669_p8 = scmp.ne.s32.totalorder %s2109_s17, %s2668_s18  ;;  %p2674_p10 = scmp.lt.s32.totalorder %s2668_s18, %s2668_s18 }
  0x9b   :  { %180 = vbcast.lane.b32.xlu1 %v178_v6, 256  ;;  %161 = vbcast.lane.b32.xlu0 %v159_v7, 256  ;;  %vm974_vm9 = vcmask 64512   ;;  %vm1834_vm10 = vcmask 392192   ;;  %vm1853_vm11 = vcmask 654336   ;;  %vm1962_vm12 = vcmask 257024  }
  0x9c   :  { %vm2013_vm13 = vcmask 523264   ;;  %vm2015_vm14 = vcmask 785408   ;;  %vm2017_vm15 = vcmask 850944   ;;  %p2675_p11 = por %p2674_p10, %p2673_p9 }
  0x9e   :  { %p2676_p12 = pnand %p2675_p11, %p2669_p8 }
  0x9f   :  { %184 = vbcast.lane.b32.xlu1 %v178_v6, 264  ;;  %165 = vbcast.lane.b32.xlu0 %v159_v7, 264 }
  0xa3   :  { %173 = vbcast.lane.b32.xlu1 %v159_v7, 280  ;;  %169 = vbcast.lane.b32.xlu0 %v159_v7, 272 }
  0xa7   :  { %192 = vbcast.lane.b32.xlu1 %v178_v6, 280  ;;  %188 = vbcast.lane.b32.xlu0 %v178_v6, 272 }
  0xab   :  { %203 = vbcast.lane.b32.xlu1 %v197_v10, 264  ;;  %199 = vbcast.lane.b32.xlu0 %v197_v10, 256 }
  0xaf   :  { %222 = vbcast.lane.b32.xlu1 %v216_v12, 264  ;;  %218 = vbcast.lane.b32.xlu0 %v216_v12, 256 }
  0xb3   :  { %211 = vbcast.lane.b32.xlu1 %v197_v10, 280  ;;  %207 = vbcast.lane.b32.xlu0 %v197_v10, 272 }
  0xb7   :  { %230 = vbcast.lane.b32.xlu1 %v216_v12, 280  ;;  %226 = vbcast.lane.b32.xlu0 %v216_v12, 272 }
  0xbb   :  { %241 = vbcast.lane.b32.xlu1 %v235_v14, 264  ;;  %237 = vbcast.lane.b32.xlu0 %v235_v14, 256 }
  0xbf   :  { %260 = vbcast.lane.b32.xlu1 %v254_v16, 264  ;;  %256 = vbcast.lane.b32.xlu0 %v254_v16, 256 }
  0xc3   :  { %249 = vbcast.lane.b32.xlu1 %v235_v14, 280  ;;  %245 = vbcast.lane.b32.xlu0 %v235_v14, 272 }
  0xc7   :  { %268 = vbcast.lane.b32.xlu1 %v254_v16, 280  ;;  %264 = vbcast.lane.b32.xlu0 %v254_v16, 272 }
  0xcb   :  { %279 = vbcast.lane.b32.xlu1 %v273_v18, 264  ;;  %275 = vbcast.lane.b32.xlu0 %v273_v18, 256 }
  0xcf   :  { %298 = vbcast.lane.b32.xlu1 %v292_v20, 264  ;;  %294 = vbcast.lane.b32.xlu0 %v292_v20, 256 }
  0xd3   :  { %287 = vbcast.lane.b32.xlu1 %v273_v18, 280  ;;  %283 = vbcast.lane.b32.xlu0 %v273_v18, 272 }
  0xd7   :  { %306 = vbcast.lane.b32.xlu1 %v292_v20, 280  ;;  %302 = vbcast.lane.b32.xlu0 %v292_v20, 272 }
 0x10d   :  { %v181_v22 = vpop.permute.xlu1 %180  ;;  %v162_v23 = vpop.permute.xlu0 %161 }
 0x111   :  { %v185_v24 = vpop.permute.xlu1 %184  ;;  %v166_v25 = vpop.permute.xlu0 %165 }
 0x112   :  { %v2386_v26 = vpack.c.bf16 %v185_v24, %v181_v22  ;;  %v2380_v27 = vpack.c.bf16 %v166_v25, %v162_v23  ;;  %v2993_v25 = vld [vmem:[#allocation6 + $0x38] sm:$0xff] }
 0x114   :  { %2381 = vmatpush3.bf16.msra.mxu0 %v2380_v27  ;;  %2387 = vmatpush3.bf16.msra.mxu1 %v2386_v26 }
 0x115   :  { %v174_v28 = vpop.permute.xlu1 %173  ;;  %v170_v29 = vpop.permute.xlu0 %169  ;;  %2382 = vmatprep.subr.bf16.mxu0 %v2738_v2  ;;  %2388 = vmatprep.subr.bf16.mxu1 %v2738_v2 }
 0x116   :  { %v2383_v30 = vpack.c.bf16 %v174_v28, %v170_v29 }
 0x118   :  { %2384 = vmatpush3.bf16.msra.mxu0 %v2383_v30 }
 0x119   :  { %v193_v32 = vpop.permute.xlu1 %192  ;;  %v189_v33 = vpop.permute.xlu0 %188  ;;  %2391 = vmatprep.subr.bf16.mxu0 %v2738_v2 }
 0x11a   :  { %v2389_v34 = vpack.c.bf16 %v193_v32, %v189_v33 }
 0x11b   :  { %2229 = vmatmul.mubr.msk.f32.vlgmr.msra.gmra.mrb[0].mxu0 %vm308_vm1, %v2943_v31 }
 0x11c   :  { %2390 = vmatpush3.bf16.msra.mxu1 %v2389_v34  ;;  %2250 = vmatprep.mubr.msk.f32.mxu0 %vm2739_vm0, %v2740_v8 }
 0x11d   :  { %v204_v36 = vpop.permute.xlu1 %203  ;;  %v200_v37 = vpop.permute.xlu0 %199  ;;  %2397 = vmatprep.subr.bf16.mxu1 %v2738_v2 }
 0x11e   :  { %v2392_v38 = vpack.c.bf16 %v204_v36, %v200_v37 }
 0x11f   :  { %2240 = vmatmul.mubr.msk.f32.vlgmr.msra.gmra.mrb[0].mxu1 %vm308_vm1, %v2948_v35 }
 0x120   :  { %2393 = vmatpush3.bf16.msra.mxu0 %v2392_v38  ;;  %2261 = vmatprep.mubr.msk.f32.mxu1 %vm2739_vm0, %v2740_v8 }
 0x121   :  { %v223_v39 = vpop.permute.xlu1 %222  ;;  %v219_v40 = vpop.permute.xlu0 %218  ;;  %2394 = vmatprep.subr.bf16.mxu0 %v2738_v2 }
 0x122   :  { %v2398_v41 = vpack.c.bf16 %v223_v39, %v219_v40 }
 0x124   :  { %2399 = vmatpush3.bf16.msra.mxu1 %v2398_v41 }
 0x125   :  { %v212_v42 = vpop.permute.xlu1 %211  ;;  %v208_v43 = vpop.permute.xlu0 %207  ;;  %2400 = vmatprep.subr.bf16.mxu1 %v2738_v2 }
 0x126   :  { %v2395_v44 = vpack.c.bf16 %v212_v42, %v208_v43  ;;  %v3021_v43 = vand.u32 127, %v156_v0 }
 0x128   :  { %2396 = vmatpush3.bf16.msra.mxu0 %v2395_v44 }
 0x129   :  { %v231_v46 = vpop.permute.xlu1 %230  ;;  %v227_v47 = vpop.permute.xlu0 %226  ;;  %2403 = vmatprep.subr.bf16.mxu0 %v2738_v2 }
 0x12a   :  { %v2401_v48 = vpack.c.bf16 %v231_v46, %v227_v47 }
 0x12b   :  { %2251 = vmatmul.mubr.msk.f32.vlgmr.msra.gmra.mrb[2].mxu0 %vm308_vm1, %v148_v45 }
 0x12c   :  { %2402 = vmatpush3.bf16.msra.mxu1 %v2401_v48  ;;  %2272 = vmatprep.mubr.msk.f32.mxu0 %vm2739_vm0, %v2740_v8 }
 0x12d   :  { %v242_v50 = vpop.permute.xlu1 %241  ;;  %v238_v51 = vpop.permute.xlu0 %237  ;;  %2409 = vmatprep.subr.bf16.mxu1 %v2738_v2 }
 0x12e   :  { %v2404_v52 = vpack.c.bf16 %v242_v50, %v238_v51 }
 0x12f   :  { %2262 = vmatmul.mubr.msk.f32.vlgmr.msra.gmra.mrb[2].mxu1 %vm308_vm1, %v2961_v49 }
 0x130   :  { %2405 = vmatpush3.bf16.msra.mxu0 %v2404_v52  ;;  %2283 = vmatprep.mubr.msk.f32.mxu1 %vm2739_vm0, %v2740_v8 }
 0x131   :  { %v261_v53 = vpop.permute.xlu1 %260  ;;  %v257_v54 = vpop.permute.xlu0 %256  ;;  %2406 = vmatprep.subr.bf16.mxu0 %v2738_v2 }
 0x132   :  { %v2410_v55 = vpack.c.bf16 %v261_v53, %v257_v54 }
 0x134   :  { %2411 = vmatpush3.bf16.msra.mxu1 %v2410_v55 }
 0x135   :  { %v250_v56 = vpop.permute.xlu1 %249  ;;  %v246_v57 = vpop.permute.xlu0 %245  ;;  %2412 = vmatprep.subr.bf16.mxu1 %v2738_v2 }
 0x136   :  { %v2407_v58 = vpack.c.bf16 %v250_v56, %v246_v57 }
 0x138   :  { %2408 = vmatpush3.bf16.msra.mxu0 %v2407_v58 }
 0x139   :  { %v269_v60 = vpop.permute.xlu1 %268  ;;  %v265_v61 = vpop.permute.xlu0 %264  ;;  %2415 = vmatprep.subr.bf16.mxu0 %v2738_v2 }
 0x13a   :  { %v2413_v62 = vpack.c.bf16 %v269_v60, %v265_v61 }
 0x13b   :  { %2273 = vmatmul.mubr.msk.f32.vlgmr.msra.gmra.mrb[4].mxu0 %vm308_vm1, %v2972_v59 }
 0x13c   :  { %2414 = vmatpush3.bf16.msra.mxu1 %v2413_v62  ;;  %2294 = vmatprep.mubr.msk.f32.mxu0 %vm2739_vm0, %v2740_v8 }
 0x13d   :  { %v280_v5 = vpop.permute.xlu1 %279  ;;  %v276_v6 = vpop.permute.xlu0 %275  ;;  %2421 = vmatprep.subr.bf16.mxu1 %v2738_v2 }
 0x13e   :  { %v2416_v7 = vpack.c.bf16 %v280_v5, %v276_v6 }
 0x13f   :  { %2284 = vmatmul.mubr.msk.f32.vlgmr.msra.gmra.mrb[4].mxu1 %vm308_vm1, %v2977_v63 }
 0x140   :  { %2417 = vmatpush3.bf16.msra.mxu0 %v2416_v7  ;;  %2305 = vmatprep.mubr.msk.f32.mxu1 %vm2739_vm0, %v2740_v8 }
 0x141   :  { %v299_v10 = vpop.permute.xlu1 %298  ;;  %v295_v12 = vpop.permute.xlu0 %294  ;;  %2418 = vmatprep.subr.bf16.mxu0 %v2738_v2 }
 0x142   :  { %v2422_v14 = vpack.c.bf16 %v299_v10, %v295_v12 }
 0x144   :  { %2423 = vmatpush3.bf16.msra.mxu1 %v2422_v14 }
 0x145   :  { %v288_v16 = vpop.permute.xlu1 %287  ;;  %v284_v18 = vpop.permute.xlu0 %283  ;;  %2424 = vmatprep.subr.bf16.mxu1 %v2738_v2 }
 0x146   :  { %v2419_v20 = vpack.c.bf16 %v288_v16, %v284_v18 }
 0x148   :  { %2420 = vmatpush3.bf16.msra.mxu0 %v2419_v20 }
 0x149   :  { %v307_v22 = vpop.permute.xlu1 %306  ;;  %v303_v23 = vpop.permute.xlu0 %302  ;;  %2318 = vmatprep.subr.mxu0 %v2740_v8 }
 0x14a   :  { %v2425_v24 = vpack.c.bf16 %v307_v22, %v303_v23 }
 0x14b   :  { %2295 = vmatmul.mubr.msk.f32.vlgmr.msra.gmra.mrb[6].mxu0 %vm308_vm1, %v2988_v21 }
 0x14c   :  { %2426 = vmatpush3.bf16.msra.mxu1 %v2425_v24  ;;  %2319 = vmatpush3.msra.mxu0 %v148_v45  ;;  %v3025_v45 = vsub.s32 %v3021_v43, %v2901_v1 }
 0x14d   :  { %2308 = vmatprep.subr.mxu1 %v2740_v8  ;;  %2320 = vmatprep.mubr.msk.f32.mxu0 %vm2739_vm0, %v2740_v8 }
 0x14e   :  { %2328 = vmatprep.subr.mxu0 %v2740_v8 }
 0x14f   :  { %2306 = vmatmul.mubr.msk.f32.vlgmr.msra.gmra.mrb[6].mxu1 %vm308_vm1, %v2993_v25 }
 0x150   :  { %2309 = vmatpush3.msra.mxu1 %v2943_v31  ;;  %2310 = vmatprep.mubr.msk.f32.mxu1 %vm2739_vm0, %v2740_v8 }
 0x151   :  { %2313 = vmatprep.subr.mxu1 %v2740_v8 }
 0x1ee   :  { %v3005_v26 = vpop.f32.mrb[0].mxu0 }
 0x1ef   :  { %902 = vperm.xlu0 %2462, %v3005_v26   ;;  %v2230_v27 = vpop.f32.mrb[1].mxu0 }
 0x1f2   :  { %v451_v28 = vpop.f32.mrb[0].mxu1 }
 0x1f3   :  { %905 = vperm.xlu1 %2463, %v451_v28   ;;  %v2241_v29 = vpop.f32.mrb[1].mxu1 }
 0x1fe   :  { %v524_v30 = vpop.f32.mrb[2].mxu0 }
 0x1ff   :  { %908 = vperm.xlu1 %2463, %v524_v30   ;;  %v2252_v32 = vpop.f32.mrb[3].mxu0 }
 0x202   :  { %v597_v33 = vpop.f32.mrb[2].mxu1 }
 0x203   :  { %911 = vperm.xlu0 %2462, %v597_v33   ;;  %v2263_v34 = vpop.f32.mrb[3].mxu1 }
 0x20e   :  { %v3008_v31 = vpop.f32.mrb[4].mxu0 }
 0x20f   :  { %914 = vperm.xlu1 %2463, %v3008_v31   ;;  %v2274_v36 = vpop.f32.mrb[5].mxu0 }
 0x212   :  { %v3011_v37 = vpop.f32.mrb[4].mxu1 }
 0x213   :  { %917 = vperm.xlu0 %2462, %v3011_v37   ;;  %v2285_v38 = vpop.f32.mrb[5].mxu1 }
 0x21e   :  { %v3014_v39 = vpop.f32.mrb[6].mxu0 }
 0x21f   :  { %920 = vperm.xlu1 %2463, %v3014_v39   ;;  %v2296_v40 = vpop.f32.mrb[7].mxu0 }
 0x222   :  { %v3017_v41 = vpop.f32.mrb[6].mxu1 }
 0x223   :  { %v2307_v42 = vpop.f32.mrb[7].mxu1  ;;  %923 = vperm.xlu0 %2462, %v3017_v41  }
 0x26e   :  { %v903_v46 = vpop.permute.xlu0 %902 }
 0x26f   :  { %v930_v50 = vrot.slane %v903_v46, %v3025_v45 }
 0x272   :  { %v906_v44 = vpop.permute.xlu1 %905 }
 0x273   :  { %v934_v48 = vrot.slane %v906_v44, %v3025_v45 }
 0x275   :  { %v960_v53 = vsel %vm959_vm2, %v934_v48, %v930_v50 }
 0x27e   :  { %v909_v47 = vpop.permute.xlu1 %908 }
 0x27f   :  { %v938_v51 = vrot.slane %v909_v47, %v3025_v45 }
 0x281   :  { %v962_v55 = vsel %vm961_vm3, %v938_v51, %v960_v53 }
 0x282   :  { %v912_v52 = vpop.permute.xlu0 %911 }
 0x283   :  { %v942_v54 = vrot.slane %v912_v52, %v3025_v45 }
 0x285   :  { %v964_v60 = vsel %vm963_vm4, %v942_v54, %v962_v55 }
 0x28e   :  { %v915_v0 = vpop.permute.xlu1 %914 }
 0x28f   :  { %v946_v57 = vrot.slane %v915_v0, %v3025_v45 }
 0x291   :  { %v966_v5 = vsel %vm965_vm5, %v946_v57, %v964_v60 }
 0x292   :  { %v918_v56 = vpop.permute.xlu0 %917 }
 0x293   :  { %v950_v61 = vrot.slane %v918_v56, %v3025_v45 }
 0x295   :  { %v968_v7 = vsel %vm967_vm6, %v950_v61, %v966_v5 }
 0x29e   :  { %v921_v58 = vpop.permute.xlu1 %920 }
 0x29f   :  { %v954_v62 = vrot.slane %v921_v58, %v3025_v45 }
 0x2a1   :  { %v970_v12 = vsel %vm969_vm7, %v954_v62, %v968_v7 }
 0x2a2   :  { %v924_v6 = vpop.permute.xlu0 %923 }
 0x2a3   :  { %v958_v10 = vrot.slane %v924_v6, %v3025_v45 }
 0x2a5   :  { %v972_v14 = vsel %vm971_vm8, %v958_v10, %v970_v12 }
 0x2a6   :  { %v975_v16 = vsel %vm974_vm9, %v972_v14, -inf }
 0x2a7   :  { %976 = vmax.xlane.f32.xlu1 %v975_v16 }
 0x334   :  { %v977_v18 = vpop.xlane.xlu1 %976 }
 0x335   :  { %v982_v20 = vrot.slane %v977_v18, %v2909_v4  ;;  %v986_v22 = vrot.slane %v977_v18, %v2906_v3  ;;  %v990_v23 = vrot.slane %v977_v18, %v2918_v9  ;;  %v994_v32 = vrot.slane %v977_v18, %v2922_v11 }
 0x336   :  { %v998_v38 = vrot.slane %v977_v18, %v2926_v13  ;;  %v1002_v44 = vrot.slane %v977_v18, %v2930_v15 }
 0x337   :  { %v1019_v24 = vsub.f32 %v3005_v26, %v982_v20  ;;  %v1020_v27 = vsub.f32 %v451_v28, %v986_v22  ;;  %v1021_v34 = vsub.f32 %v524_v30, %v990_v23  ;;  %v1022_v40 = vsub.f32 %v597_v33, %v994_v32 }
 0x338   :  { %v1023_v46 = vsub.f32 %v3008_v31, %v998_v38  ;;  %v1006_v26 = vrot.slane %v977_v18, %v2934_v17  ;;  %v1024_v28 = vsub.f32 %v3011_v37, %v1002_v44  ;;  %v1010_v33 = vrot.slane %v977_v18, %v2938_v19 }
 0x339   :  { %v1027_v29 = vmul.f32 1.442695, %v1019_v24  ;;  %v1029_v36 = vmul.f32 1.442695, %v1020_v27  ;;  %v1031_v42 = vmul.f32 1.442695, %v1021_v34 }
 0x33a   :  { %v1033_v47 = vmul.f32 1.442695, %v1022_v40  ;;  %v1035_v30 = vmul.f32 1.442695, %v1023_v46  ;;  %v1025_v51 = vsub.f32 %v3014_v39, %v1006_v26  ;;  %v1037_v52 = vmul.f32 1.442695, %v1024_v28 }
 0x33b   :  { %2466 = vpow2.f32 %v1027_v29  ;;  %v1026_v31 = vsub.f32 %v3017_v41, %v1010_v33 }
 0x33c   :  { %2468 = vpow2.f32 %v1029_v36  ;;  %v1039_v0 = vmul.f32 1.442695, %v1025_v51 }
 0x33d   :  { %2470 = vpow2.f32 %v1031_v42  ;;  %v1041_v37 = vmul.f32 1.442695, %v1026_v31 }
 0x33e   :  { %2472 = vpow2.f32 %v1033_v47 }
 0x33f   :  { %2474 = vpow2.f32 %v1035_v30 }
 0x340   :  { %2476 = vpow2.f32 %v1037_v52 }
 0x341   :  { %2478 = vpow2.f32 %v1039_v0 }
 0x342   :  { %2480 = vpow2.f32 %v1041_v37 }
 0x345   :  { %v2467_v48 = vpop.eup %2466 }
 0x346   :  { %1052 = vperm.xlu0 %2462, %v2467_v48   ;;  %v2469_v50 = vpop.eup %2468 }
 0x347   :  { %v2471_v53 = vpop.eup %2470 }
 0x348   :  { %v2473_v54 = vpop.eup %2472 }
 0x349   :  { %v2475_v55 = vpop.eup %2474 }
 0x34a   :  { %1055 = vperm.xlu0 %2462, %v2469_v50   ;;  %v2477_v56 = vpop.eup %2476 }
 0x34b   :  { %v2479_v57 = vpop.eup %2478 }
 0x34c   :  { %v2481_v39 = vpop.eup %2480 }
 0x34e   :  { %1058 = vperm.xlu0 %2462, %v2471_v53  }
 0x352   :  { %1061 = vperm.xlu0 %2462, %v2473_v54  }
 0x356   :  { %1064 = vperm.xlu0 %2462, %v2475_v55  }
 0x35a   :  { %1067 = vperm.xlu0 %2462, %v2477_v56  }
 0x35e   :  { %1070 = vperm.xlu0 %2462, %v2479_v57  }
 0x362   :  { %1073 = vperm.xlu0 %2462, %v2481_v39  }
 0x3c5   :  { %v1053_v58 = vpop.permute.xlu0 %1052 }
 0x3c6   :  { %v1078_v10 = vrot.slane %v1053_v58, %v3025_v45 }
 0x3c9   :  { %v1056_v60 = vpop.permute.xlu0 %1055 }
 0x3ca   :  { %v1082_v6 = vrot.slane %v1056_v60, %v3025_v45 }
 0x3cc   :  { %v1107_v18 = vsel %vm959_vm2, %v1082_v6, %v1078_v10 }
 0x3cd   :  { %v1059_v61 = vpop.permute.xlu0 %1058 }
 0x3ce   :  { %v1086_v7 = vrot.slane %v1059_v61, %v3025_v45 }
 0x3d0   :  { %v1108_v22 = vsel %vm961_vm3, %v1086_v7, %v1107_v18  ;;  %v1836_v18 = vld [vmem:[#allocation11] sm:$0xff] }
 0x3d1   :  { %v1062_v62 = vpop.permute.xlu0 %1061 }
 0x3d2   :  { %v1090_v12 = vrot.slane %v1062_v62, %v3025_v45 }
 0x3d4   :  { %v1109_v24 = vsel %vm963_vm4, %v1090_v12, %v1108_v22  ;;  %v1838_v22 = vld [vmem:[#allocation11 + $0x10] sm:$0xff] }
 0x3d5   :  { %v1065_v41 = vpop.permute.xlu0 %1064 }
 0x3d6   :  { %v1094_v14 = vrot.slane %v1065_v41, %v3025_v45 }
 0x3d8   :  { %v1110_v27 = vsel %vm965_vm5, %v1094_v14, %v1109_v24  ;;  %v1839_v24 = vld [vmem:[#allocation11 + $0x18] sm:$0xff] }
 0x3d9   :  { %v1068_v5 = vpop.permute.xlu0 %1067 }
 0x3da   :  { %v1098_v20 = vrot.slane %v1068_v5, %v3025_v45 }
 0x3dc   :  { %v1111_v32 = vsel %vm967_vm6, %v1098_v20, %v1110_v27  ;;  %v1837_v20 = vld [vmem:[#allocation11 + $0x8] sm:$0xff]  ;;  %v2431_v27 = vpack.c.bf16 %v1839_v24, %v1838_v22 }
 0x3dd   :  { %v1071_v16 = vpop.permute.xlu0 %1070 }
 0x3de   :  { %v1102_v23 = vrot.slane %v1071_v16, %v3025_v45 }
 0x3e0   :  { %v1112_v36 = vsel %vm969_vm7, %v1102_v23, %v1111_v32  ;;  %v2428_v23 = vpack.c.bf16 %v1837_v20, %v1836_v18  ;;  %v1841_v32 = vld [vmem:[#allocation11 + $0x28] sm:$0xff] }
 0x3e1   :  { %v1074_v29 = vpop.permute.xlu0 %1073 }
 0x3e2   :  { %v1106_v34 = vrot.slane %v1074_v29, %v3025_v45  ;;  %v1840_v29 = vld [vmem:[#allocation11 + $0x20] sm:$0xff] }
 0x3e4   :  { %v1113_v38 = vsel %vm971_vm8, %v1106_v34, %v1112_v36  ;;  %v2434_v34 = vpack.c.bf16 %v1841_v32, %v1840_v29  ;;  %v1843_v36 = vld [vmem:[#allocation11 + $0x38] sm:$0xff] }
 0x3e5   :  { %v1115_v40 = vsel %vm974_vm9, %v1113_v38, 0.0  ;;  %v2465_v29 = vld [vmem:[#allocation14 + $0x8] sm:$0xff]  }
 0x3e6   :  { %1116 = vadd.xlane.f32.xlu0 %v1115_v40  ;;  %v1844_v40 = vld [vmem:[#allocation11 + $0x40] sm:$0xff] }
 0x473   :  { %v1117_v42 = vpop.xlane.xlu0 %1116 }
 0x474   :  { %2482 = vrcp.f32 %v1117_v42  ;;  %v1845_v42 = vld [vmem:[#allocation11 + $0x48] sm:$0xff] }
 0x47e   :  { %v2483_v44 = vpop.eup %2482 }
 0x47f   :  { %v1143_v46 = vrot.slane %v2483_v44, %v2930_v15  ;;  %v1123_v47 = vrot.slane %v2483_v44, %v2909_v4  ;;  %v1127_v30 = vrot.slane %v2483_v44, %v2906_v3  ;;  %v1131_v51 = vrot.slane %v2483_v44, %v2918_v9 }
 0x480   :  { %v1135_v31 = vrot.slane %v2483_v44, %v2922_v11  ;;  %v1139_v37 = vrot.slane %v2483_v44, %v2926_v13  ;;  %v1147_v4 = vrot.slane %v2483_v44, %v2934_v17  ;;  %v1151_v3 = vrot.slane %v2483_v44, %v2938_v19 }
 0x481   :  { %v1165_v26 = vmul.f32 %v2477_v56, %v1143_v46  ;;  %v1160_v28 = vmul.f32 %v2467_v48, %v1123_v47  ;;  %v1161_v33 = vmul.f32 %v2469_v50, %v1127_v30  ;;  %v1162_v52 = vmul.f32 %v2471_v53, %v1131_v51 }
 0x482   :  { %v1163_v0 = vmul.f32 %v2473_v54, %v1135_v31  ;;  %v1164_v15 = vmul.f32 %v2475_v55, %v1139_v37  ;;  %v1166_v48 = vmul.f32 %v2479_v57, %v1147_v4  ;;  %v1167_v50 = vmul.f32 %v2481_v39, %v1151_v3 }
 0x483   :  { %1570 = vperm.xlu0 %2462, %v1165_v26   ;;  %1170 = vperm.xlu1 %2463, %v1160_v28   ;;  %v1971_v9 = vadd.s32 4294967200, %v3021_v43  ;;  %v2440_v44 = vpack.c.bf16 %v1845_v42, %v1844_v40 }
 0x485   :  { %v3082_v11 = vsub.s32 %v1971_v9, %v2901_v1 }
 0x487   :  { %1250 = vperm.xlu1 %2463, %v1161_v33  }
 0x48b   :  { %1330 = vperm.xlu1 %2463, %v1162_v52  }
 0x48f   :  { %1410 = vperm.xlu1 %2463, %v1163_v0  }
 0x493   :  { %1490 = vperm.xlu1 %2463, %v1164_v15  }
 0x497   :  { %1650 = vperm.xlu1 %2463, %v1166_v48  }
 0x49b   :  { %1730 = vperm.xlu1 %2463, %v1167_v50  }
 0x502   :  { %v1171_v53 = vpop.permute.xlu1 %1170  ;;  %v1571_v60 = vpop.permute.xlu0 %1570 }
 0x503   :  { %v1175_v54 = vrot.slane %v1171_v53, %v3025_v45  ;;  %v1975_v17 = vrot.slane %v1171_v53, %v3082_v11  ;;  %v1995_v7 = vrot.slane %v1571_v60, %v3082_v11 }
 0x505   :  { %2311 = vmatmul.mubr.msk.f32.vlgmr.msra.gmra.mrb[8].mxu1 %vm974_vm9, %v1175_v54 }
 0x506   :  { %v1251_v13 = vpop.permute.xlu1 %1250  ;;  %2314 = vmatpush3.msra.mxu1 %v2948_v35  ;;  %2315 = vmatprep.mubr.msk.f32.mxu1 %vm2739_vm0, %v2740_v8 }
 0x507   :  { %v1255_v19 = vrot.slane %v1251_v13, %v3025_v45  ;;  %v1979_v43 = vrot.slane %v1251_v13, %v3082_v11  ;;  %2323 = vmatprep.subr.mxu1 %v2740_v8 }
 0x509   :  { %v2004_v1 = vsel %vm959_vm2, %v1979_v43, %v1975_v17  ;;  %2316 = vmatmul.mubr.msk.f32.vlgmr.msra.gmra.mrb[10].mxu1 %vm974_vm9, %v1255_v19 }
 0x50a   :  { %v1331_v55 = vpop.permute.xlu1 %1330  ;;  %2324 = vmatpush3.msra.mxu1 %v2961_v49  ;;  %2325 = vmatprep.mubr.msk.f32.mxu1 %vm2739_vm0, %v2740_v8 }
 0x50b   :  { %v1335_v35 = vrot.slane %v1331_v55, %v3025_v45  ;;  %v1983_v56 = vrot.slane %v1331_v55, %v3082_v11  ;;  %2333 = vmatprep.subr.mxu1 %v2740_v8 }
 0x50d   :  { %v2005_v57 = vsel %vm961_vm3, %v1983_v56, %v2004_v1  ;;  %2321 = vmatmul.mubr.msk.f32.vlgmr.msra.gmra.mrb[8].mxu0 %vm974_vm9, %v1335_v35 }
 0x50e   :  { %v1411_v39 = vpop.permute.xlu1 %1410  ;;  %2329 = vmatpush3.msra.mxu0 %v2972_v59  ;;  %2330 = vmatprep.mubr.msk.f32.mxu0 %vm2739_vm0, %v2740_v8  ;;  %v1575_v59 = vrot.slane %v1571_v60, %v3025_v45 }
 0x50f   :  { %v1415_v49 = vrot.slane %v1411_v39, %v3025_v45  ;;  %v1987_v58 = vrot.slane %v1411_v39, %v3082_v11  ;;  %2338 = vmatprep.subr.mxu0 %v2740_v8 }
 0x511   :  { %v2006_v61 = vsel %vm963_vm4, %v1987_v58, %v2005_v57  ;;  %2326 = vmatmul.mubr.msk.f32.vlgmr.msra.gmra.mrb[12].mxu1 %vm974_vm9, %v1415_v49  ;;  %v1808_v49 = vld [vmem:[#allocation3] sm:$0xff] }
 0x512   :  { %v1491_v62 = vpop.permute.xlu1 %1490  ;;  %2334 = vmatpush3.msra.mxu1 %v2977_v63  ;;  %2335 = vmatprep.mubr.msk.f32.mxu1 %vm2739_vm0, %v2740_v8 }
 0x513   :  { %v1495_v41 = vrot.slane %v1491_v62, %v3025_v45  ;;  %v1991_v5 = vrot.slane %v1491_v62, %v3082_v11  ;;  %2343 = vmatprep.subr.mxu1 %v2740_v8 }
 0x515   :  { %v2007_v6 = vsel %vm965_vm5, %v1991_v5, %v2006_v61  ;;  %2331 = vmatmul.mubr.msk.f32.vlgmr.msra.gmra.mrb[10].mxu0 %vm974_vm9, %v1495_v41  ;;  %2336 = vmatmul.mubr.msk.f32.vlgmr.msra.gmra.mrb[14].mxu1 %vm974_vm9, %v1575_v59  ;;  %v2141_v61 = vld [vmem:[#allocation12] ss:$0 sm:$0xff] }
 0x516   :  { %v1651_v63 = vpop.permute.xlu1 %1650  ;;  %2339 = vmatpush3.msra.mxu0 %v2988_v21  ;;  %2340 = vmatprep.mubr.msk.f32.mxu0 %vm2739_vm0, %v2740_v8  ;;  %v2008_v14 = vsel %vm967_vm6, %v1995_v7, %v2007_v6  ;;  %v155_v6 = vld [vmem:[#allocation9] sm:$0xff] }
 0x517   :  { %v1655_v10 = vrot.slane %v1651_v63, %v3025_v45  ;;  %v1999_v12 = vrot.slane %v1651_v63, %v3082_v11  ;;  %2344 = vmatpush3.msra.mxu1 %v2993_v25  ;;  %2345 = vmatprep.mubr.msk.f32.mxu1 %vm2739_vm0, %v2740_v8 }
 0x518   :  { %2427 = vmatprep.subr.bf16.mxu0 %v2738_v2  ;;  %2371 = vmatprep.subr.bf16.mxu1 %v2740_v8 }
 0x519   :  { %v3134_v21 = vsel %vm969_vm7, %v1999_v12, %v2008_v14  ;;  %2341 = vmatmul.mubr.msk.f32.vlgmr.msra.gmra.mrb[12].mxu0 %vm974_vm9, %v1655_v10 }
 0x51a   :  { %v3137_v16 = vpop.permute.xlu1 %1730  ;;  %2368 = vmatprep.mubr.msk.f32.mxu0 %vm2739_vm0, %v2740_v8  ;;  %2429 = vmatpush3.bf16.msra.mxu0 %v2428_v23 }
 0x51b   :  { %v1735_v25 = vrot.slane %v3137_v16, %v3025_v45  ;;  %2430 = vmatprep.subr.bf16.mxu0 %v2738_v2  ;;  %v1842_v45 = vld [vmem:[#allocation11 + $0x30] sm:$0xff] }
 0x51c   :  { %v2437_v38 = vpack.c.bf16 %v1843_v36, %v1842_v45 }
 0x51d   :  { %2346 = vmatmul.mubr.msk.f32.vlgmr.msra.gmra.mrb[16].mxu1 %vm974_vm9, %v1735_v25 }
 0x51e   :  { %2375 = vmatprep.mubr.msk.bf16.mxu1 %vm2739_vm0, %v2740_v8  ;;  %2432 = vmatpush3.bf16.msra.mxu0 %v2431_v27  ;;  %v2464_v27 = vld [vmem:[#allocation14] sm:$0xff]  }
 0x51f   :  { %2433 = vmatprep.subr.bf16.mxu0 %v2738_v2  ;;  %2372 = vmatpush3.bf16.msra.mxu1 %v2464_v27 }
 0x520   :  { %2373 = vmatprep.subr.bf16.mxu1 %v2740_v8 }
 0x522   :  { %2435 = vmatpush3.bf16.msra.mxu0 %v2434_v34 }
 0x523   :  { %2436 = vmatprep.subr.bf16.mxu0 %v2738_v2  ;;  %2374 = vmatpush3.bf16.msra.mxu1 %v2465_v29 }
 0x526   :  { %2438 = vmatpush3.bf16.msra.mxu0 %v2437_v38  ;;  %v2003_v38 = vrot.slane %v3137_v16, %v3082_v11 }
 0x527   :  { %2439 = vmatprep.subr.bf16.mxu0 %v2738_v2 }
 0x52a   :  { %2441 = vmatpush3.bf16.msra.mxu0 %v2440_v44 }
 0x5d8   :  { %v1244_v46 = vpop.f32.mrb[8].mxu1 }
 0x5d9   :  { %v2312_v47 = vpop.f32.mrb[9].mxu1 }
 0x5dc   :  { %v1324_v26 = vpop.f32.mrb[10].mxu1 }
 0x5dd   :  { %v1817_v28 = vrot.slane %v1324_v26, 7  ;;  %v2317_v30 = vpop.f32.mrb[11].mxu1 }
 0x5df   :  { %v1818_v33 = vsel %vm959_vm2, %v1817_v28, %v1244_v46  ;;  %v2010_v46 = vsel %vm971_vm8, %v2003_v38, %v3134_v21 }
 0x5e0   :  { %v1404_v51 = vpop.f32.mrb[8].mxu0 }
 0x5e1   :  { %v1819_v52 = vrot.slane %v1404_v51, 6  ;;  %v2322_v31 = vpop.f32.mrb[9].mxu0 }
 0x5e3   :  { %v1820_v0 = vsel %vm961_vm3, %v1819_v52, %v1818_v33 }
 0x5e4   :  { %v1484_v37 = vpop.f32.mrb[12].mxu1 }
 0x5e5   :  { %v1821_v15 = vrot.slane %v1484_v37, 5  ;;  %v2327_v4 = vpop.f32.mrb[13].mxu1 }
 0x5e7   :  { %v1822_v48 = vsel %vm963_vm4, %v1821_v15, %v1820_v0 }
 0x5e8   :  { %v1564_v3 = vpop.f32.mrb[10].mxu0  ;;  %v1644_v2 = vpop.f32.mrb[14].mxu1 }
 0x5e9   :  { %v1823_v50 = vrot.slane %v1564_v3, 4  ;;  %v1825_v9 = vrot.slane %v1644_v2, 3  ;;  %v2332_v53 = vpop.f32.mrb[11].mxu0  ;;  %v2337_v54 = vpop.f32.mrb[15].mxu1 }
 0x5eb   :  { %v1824_v13 = vsel %vm965_vm5, %v1823_v50, %v1822_v48 }
 0x5ec   :  { %v1826_v17 = vsel %vm967_vm6, %v1825_v9, %v1824_v13  ;;  %v1724_v19 = vpop.f32.mrb[12].mxu0 }
 0x5ed   :  { %v1827_v43 = vrot.slane %v1724_v19, 2  ;;  %v2342_v1 = vpop.f32.mrb[13].mxu0 }
 0x5ef   :  { %v1828_v55 = vsel %vm969_vm7, %v1827_v43, %v1826_v17 }
 0x5f0   :  { %v1804_v35 = vpop.f32.mrb[16].mxu1 }
 0x5f1   :  { %v1829_v56 = vrot.slane %v1804_v35, 1  ;;  %v2347_v57 = vpop.f32.mrb[17].mxu1 }
 0x5f3   :  { %v1830_v39 = vsel %vm971_vm8, %v1829_v56, %v1828_v55 }
 0x5f4   :  { %1831 = vrot.lane.b32.xlu1 %v1830_v39, %s2742_s7 }
 0x666   :  { %v1832_v58 = vpop.permute.xlu1 %1831 }
 0x667   :  { %v1835_v60 = vsel %vm1834_vm10, %v1808_v49, %v1832_v58 }
 0x668   :  { %2369 = vmatmul.mubr.msk.f32.vlgmr.msra.gmra.mrb[14].mxu0 %vm1853_vm11, %v1835_v60 }
 0x73b   :  { %v1923_v62 = vpop.f32.mrb[14].mxu0 }
 0x73c   :  { %v1924_v59 = vadd.f32 %v2141_v61, %v1923_v62  ;;  %v2370_v41 = vpop.f32.mrb[15].mxu0 }
 0x73e   :  { %2484 = vtanh.f32 %v1924_v59  ;;  %v2143_v7 = vmul.f32 -1.442695, %v1924_v59 }
 0x740   :  { %2486 = vpow2.f32 %v2143_v7 }
 0x748   :  { %v2485_v5 = vpop.eup %2484 }
 0x749   :  { %1940 = vrot.lane.b32.xlu1 %v2485_v5, %s2735_s4 }
 0x74a   :  { %v2487_v63 = vpop.eup %2486 }
 0x74b   :  { %v1930_v10 = vadd.f32 1.0, %v2487_v63 }
 0x74d   :  { %1935 = vrot.lane.b32.xlu1 %v155_v6, %s2743_s2  ;;  %2488 = vrcp.f32 %v1930_v10 }
 0x757   :  { %v2489_v12 = vpop.eup %2488 }
 0x7bb   :  { %v1941_v14 = vpop.permute.xlu1 %1940 }
 0x7bc   :  { %v1943_v25 = vmul.f32 %v2489_v12, %v1941_v14 }
 0x7be   :  { %1945 = vrot.lane.b32.xlu0 %v1943_v25, %s2743_s2 }
 0x7bf   :  { %v1936_v18 = vpop.permute.xlu1 %1935 }
 0x7c0   :  { %v1938_v20 = vmul.f32 %v2489_v12, %v1936_v18 }
 0x830   :  { %v1946_v22 = vpop.permute.xlu0 %1945 }
 0x831   :  { %v1948_v23 = vadd.f32 %v1946_v22, %v1938_v20 }
 0x833   :  { %2490 = vtanh.f32 %v1948_v23 }
 0x83d   :  { %v2491_v24 = vpop.eup %2490 }
 0x83e   :  { %1951 = vrot.lane.b32.xlu1 %v2491_v24, %s2735_s4 }
 0x8b0   :  { %v1952_v32 = vpop.permute.xlu1 %1951 }
 0x8b1   :  { %v1954_v34 = vmul.f32 %v2489_v12, %v1952_v32 }
 0x8b3   :  { %v2149_v45 = vpack.c.bf16 %v1954_v34, %v1954_v34  ;;  %1965 = vrot.lane.b32.xlu1 %v1954_v34, %s2743_s2 }
 0x8b5   :  { %1959 = vrot.lane.b32.xlu0 %v2149_v45, %s2743_s2 }
 0x8b9   :  { %1968 = vrot.lane.b32.xlu0 %v1830_v39, %s2735_s4 }
 0x925   :  { %v1966_v40 = vpop.permute.xlu1 %1965 }
 0x926   :  { %v2012_v8 = vsel %vm308_vm1, %v1966_v40, %v1948_v23 }
 0x927   :  { %v1960_v36 = vpop.permute.xlu0 %1959 }
 0x928   :  { %1963 = vst.msk [vmem:[#allocation2] sm:$0xf] %vm1962_vm12, %v1960_v36 }
 0x92b   :  { %v1969_v42 = vpop.permute.xlu0 %1968 }
 0x92c   :  { %v2014_v44 = vsel %vm2013_vm13, %v2012_v8, %v1969_v42 }
 0x92d   :  { %v2016_v47 = vsel %vm2015_vm14, %v2014_v44, %v2010_v46 }
 0x92e   :  { %v2018_v26 = vsel %vm2017_vm15, %v2016_v47, 0.0 }
 0x92f   :  { %v2020_v28 = vld [vmem:[#allocation2] sm:$0xf]  ;;  %2019 = vst [vmem:[#allocation18] sm:$0xff] %v2018_v26 }
 0x930   :  { %2376 = vmatmul.mubr.msk.bf16.vlgmr.msra.gmra.mrb[20].mxu1 %vm308_vm1, %v2020_v28 }
 0x931   :  { %2679 = shalt.err (!%p2676_p12)
}
 0x932   :  { %s2680_s23 = scalar_lea.hbm %s3200_s9, 128 }
 0x933   :  { %p2681_p13 = scmp.ne.s32.totalorder %s3200_s9, %s2680_s23  ;;  %p2684_p0 = scmp.lt.u32.totalorder %s2680_s23, %s3200_s9 }
 0x935   :  { %p2686_p1 = pnand %p2684_p0, %p2681_p13 }
 0x937   :  { %2689 = shalt.err (!%p2686_p1)
}
 0x938   :  { %2111 = dma.vmem_to_hbm [thread:$0]  %s2109_s17, 128, %s3200_s9, [#allocation19]   ;;  %v2145_v11 = vld [vmem:[#allocation15] ss:$0 sm:$0xff] }
 0x939   :  { %s2745_s20 = smov [#allocation17]  }
 0x93a   :  { %s2098_s0 = sshll.u32 %s2745_s20, 4  ;;  %s2099_s0 = int_to_ptr.vmem [resolvable:$true] %s2098_s0 }
 0x93b   :  { %s2690_s28 = scalar_lea.vmem %s2099_s0, 128  ;;  %p2695_p3 = scmp.lt.s32.totalorder %s2099_s0, %s2099_s0 }
 0x93c   :  { %p2691_p2 = scmp.ne.s32.totalorder %s2099_s0, %s2690_s28  ;;  %p2696_p4 = scmp.lt.s32.totalorder %s2690_s28, %s2690_s28 }
 0x93e   :  { %p2697_p5 = por %p2696_p4, %p2695_p3 }
 0x940   :  { %p2698_p6 = pnand %p2697_p5, %p2691_p2 }
 0xa03   :  { %v2082_v21 = vpop.f32.mrb[20].mxu1 }
 0xa04   :  { %v2083_v16 = vadd.f32 %v2145_v11, %v2082_v21  ;;  %v2377_v30 = vpop.f32.mrb[21].mxu1 }
 0xa05   :  { %v2085_v33 = vpop.f32.mrb[22].mxu1 }
 0xa06   :  { %2088 = vst [vmem:[#allocation17] sm:$0xff] %v2083_v16  ;;  %v2378_v51 = vpop.f32.mrb[23].mxu1 }
 0xa07   :  { %2701 = shalt.err (!%p2698_p6)
}
 0xa08   :  { %s2702_s9 = scalar_lea.hbm %s3199_s8, 128 }
 0xa09   :  { %p2703_p7 = scmp.ne.s32.totalorder %s3199_s8, %s2702_s9  ;;  %p2706_p8 = scmp.lt.u32.totalorder %s2702_s9, %s3199_s8 }
 0xa0b   :  { %p2708_p9 = pnand %p2706_p8, %p2703_p7 }
 0xa0d   :  { %2711 = shalt.err (!%p2708_p9)
}
 0xa0e   :  { %2101 = dma.vmem_to_hbm [thread:$0]  %s2099_s0, 128, %s3199_s8, [#allocation5]  }
 0xa0f   :  { %2722 = dma.done.wait [#allocation5], 128  }
 0xa10   :  { %2723 = vsyncadd [#allocation5], 4294967168 }
 0xa11   :  { %2724 = dma.done.wait [#allocation19], 128  }
 0xa12   :  { %2725 = vsyncadd [#allocation19], 4294967168 }
 0xa13   :  { %2118 = vsyncpa [#allocation4], 1 }
 0xa14   :  { %2119 = vsyncpa [#allocation7], 1 }
 0xa15   :  { %2120 = vsyncpa [#allocation10], 1 }
 0xa16   :  { %2121 = vsyncpa [#allocation13], 1 }
 0xa17   :  { %2122 = vsyncpa [#allocation16], 1 }
 0xa18   :  { %2123 = vsyncpa [#allocation5], 1 }
 0xa19   :  { %2124 = vsyncpa [#allocation19], 1 }

// kernel: tpu_custom_call.1
= control target key start
LH: loop header
LB: loop body
LE: loop exit
PB: predicated region body
PF: predicated region fallthrough
CT: control target
= control target key end

     0   :  { %15 = vsyncpa [#allocation4], 0  ;;  %s3191_s0 = inlined_call_operand.hbm [shape: f32[8,48], index: 0, kind: input, shape index: {}]   ;;  %s3192_s1 = inlined_call_operand.hbm [shape: f32[8,8,32], index: 1, kind: input, shape index: {}]   ;;  %s3193_s2 = inlined_call_operand.hbm [shape: f32[8,32], index: 2, kind: input, shape index: {}]   ;;  %s3194_s3 = inlined_call_operand.hbm [shape: f32[8,32], index: 3, kind: input, shape index: {}]   ;;  %s3195_s4 = inlined_call_operand.hbm [shape: f32[80,128], index: 4, kind: input, shape index: {}]   ;;  %s3196_s5 = inlined_call_operand.hbm [shape: f32[1,128], index: 5, kind: input, shape index: {}]   ;;  %s3197_s6 = inlined_call_operand.hbm [shape: bf16[32,128], index: 6, kind: input, shape index: {}]   ;;  %s3198_s7 = inlined_call_operand.hbm [shape: f32[1,128], index: 7, kind: input, shape index: {}]   ;;  %s3199_s8 = inlined_call_operand.hbm [shape: f32[8,128], index: 8, kind: output, shape index: {0}]   ;;  %s3200_s9 = inlined_call_operand.hbm [shape: f32[1,8,128], index: 9, kind: output, shape index: {1}]  }
   0x1   :  { %16 = vsyncpa [#allocation7], 0 }
   0x2   :  { %17 = vsyncpa [#allocation10], 0 }
   0x3   :  { %18 = vsyncpa [#allocation13], 0 }
   0x4   :  { %19 = vsyncpa [#allocation16], 0 }
   0x5   :  { %20 = vsyncpa [#allocation5], 0 }
   0x6   :  { %21 = vsyncpa [#allocation19], 0  ;;  %s2726_s30 = smov [#allocation6]   ;;  %s2492_s13 = scalar_lea.hbm %s3192_s1, 1024 }
   0x7   :  { %s37_s10 = sshll.u32 %s2726_s30, 4  ;;  %p2493_p0 = scmp.ne.s32.totalorder %s3192_s1, %s2492_s13  ;;  %s38_s10 = int_to_ptr.vmem [resolvable:$true] %s37_s10 }
   0x8   :  { %p2496_p1 = scmp.lt.u32.totalorder %s2492_s13, %s3192_s1 }
   0xa   :  { %p2498_p2 = pnand %p2496_p1, %p2493_p0 }
   0xc   :  { %2501 = shalt.err (!%p2498_p2)
}
   0xd   :  { %s2502_s18 = scalar_lea.vmem %s38_s10, 1024  ;;  %p2507_p4 = scmp.lt.s32.totalorder %s38_s10, %s38_s10 }
   0xe   :  { %p2503_p3 = scmp.ne.s32.totalorder %s38_s10, %s2502_s18  ;;  %p2508_p5 = scmp.lt.s32.totalorder %s2502_s18, %s2502_s18 }
  0x10   :  { %p2509_p6 = por %p2508_p5, %p2507_p4 }
  0x12   :  { %p2510_p7 = pnand %p2509_p6, %p2503_p3 }
  0x14   :  { %2513 = shalt.err (!%p2510_p7)
}
  0x15   :  { %s2727_s19 = smov 128   ;;  %s2728_s20 = smov 8  }
  0x16   :  { %43 = dma.hbm_to_vmem [thread:$0]  %s3192_s1, 1024, %s38_s10, [#allocation7], %s2727_s19, %s2727_s19, %s2728_s20  }
  0x17   :  { %s2729_s23 = smov [#allocation9]   ;;  %s2730_s25 = smov [#allocation12]  }
  0x18   :  { %s60_s24 = sshll.u32 %s2729_s23, 4  ;;  %s82_s26 = sshll.u32 %s2730_s25, 4  ;;  %s61_s24 = int_to_ptr.vmem [resolvable:$true] %s60_s24  ;;  %s83_s26 = int_to_ptr.vmem [resolvable:$true] %s82_s26 }
  0x19   :  { %s2514_s29 = scalar_lea.hbm %s3194_s3, 128 }
  0x1a   :  { %p2515_p8 = scmp.ne.s32.totalorder %s3194_s3, %s2514_s29  ;;  %p2518_p9 = scmp.lt.u32.totalorder %s2514_s29, %s3194_s3 }
  0x1c   :  { %p2520_p10 = pnand %p2518_p9, %p2515_p8 }
  0x1e   :  { %2523 = shalt.err (!%p2520_p10)
}
  0x1f   :  { %s2524_s1 = scalar_lea.vmem %s61_s24, 128  ;;  %p2529_p12 = scmp.lt.s32.totalorder %s61_s24, %s61_s24 }
  0x20   :  { %p2525_p11 = scmp.ne.s32.totalorder %s61_s24, %s2524_s1  ;;  %p2530_p13 = scmp.lt.s32.totalorder %s2524_s1, %s2524_s1 }
  0x22   :  { %p2531_p0 = por %p2530_p13, %p2529_p12 }
  0x24   :  { %p2532_p1 = pnand %p2531_p0, %p2525_p11 }
  0x26   :  { %2535 = shalt.err (!%p2532_p1)
}
  0x27   :  { %63 = dma.hbm_to_vmem [thread:$0]  %s3194_s3, 128, %s61_s24, [#allocation10]  }
  0x28   :  { %s2536_s17 = scalar_lea.hbm %s3196_s5, 16 }
  0x29   :  { %p2537_p2 = scmp.ne.s32.totalorder %s3196_s5, %s2536_s17  ;;  %p2540_p3 = scmp.lt.u32.totalorder %s2536_s17, %s3196_s5 }
  0x2b   :  { %p2542_p4 = pnand %p2540_p3, %p2537_p2 }
  0x2d   :  { %2545 = shalt.err (!%p2542_p4)
}
  0x2e   :  { %s2546_s25 = scalar_lea.vmem %s83_s26, 16  ;;  %s2550_s27 = scalar_lea.vmem %s83_s26, 32 }
  0x2f   :  { %p2547_p5 = scmp.ne.s32.totalorder %s83_s26, %s2546_s25  ;;  %p2551_p6 = scmp.lt.s32.totalorder %s83_s26, %s83_s26 }
  0x30   :  { %p2552_p7 = scmp.lt.s32.totalorder %s2550_s27, %s2546_s25 }
  0x32   :  { %p2553_p8 = por %p2552_p7, %p2551_p6 }
  0x34   :  { %p2554_p9 = pnand %p2553_p8, %p2547_p5 }
  0x36   :  { %2557 = shalt.err (!%p2554_p9)
}
  0x37   :  { %85 = dma.hbm_to_vmem [thread:$0]  %s3196_s5, 16, %s83_s26, [#allocation13]  }
  0x38   :  { %s2731_s28 = smov [#allocation3]   ;;  %s2732_s30 = smov [#allocation8]  }
  0x39   :  { %s28_s29 = sshll.u32 %s2731_s28, 4  ;;  %s50_s11 = sshll.u32 %s2732_s30, 4  ;;  %s29_s29 = int_to_ptr.vmem [resolvable:$true] %s28_s29  ;;  %s51_s11 = int_to_ptr.vmem [resolvable:$true] %s50_s11 }
  0x3a   :  { %s2558_s1 = scalar_lea.hbm %s3191_s0, 128 }
  0x3b   :  { %p2559_p10 = scmp.ne.s32.totalorder %s3191_s0, %s2558_s1  ;;  %p2562_p11 = scmp.lt.u32.totalorder %s2558_s1, %s3191_s0 }
  0x3d   :  { %p2564_p12 = pnand %p2562_p11, %p2559_p10 }
  0x3f   :  { %2567 = shalt.err (!%p2564_p12)
}
  0x40   :  { %s2568_s5 = scalar_lea.vmem %s29_s29, 128  ;;  %p2573_p0 = scmp.lt.s32.totalorder %s29_s29, %s29_s29 }
  0x41   :  { %p2569_p13 = scmp.ne.s32.totalorder %s29_s29, %s2568_s5  ;;  %p2574_p1 = scmp.lt.s32.totalorder %s2568_s5, %s2568_s5 }
  0x43   :  { %p2575_p2 = por %p2574_p1, %p2573_p0 }
  0x45   :  { %p2576_p3 = pnand %p2575_p2, %p2569_p13 }
  0x47   :  { %2579 = shalt.err (!%p2576_p3)
}
  0x48   :  { %31 = dma.hbm_to_vmem [thread:$0]  %s3191_s0, 128, %s29_s29, [#allocation4]  }
  0x49   :  { %s2580_s22 = scalar_lea.hbm %s3193_s2, 128 }
  0x4a   :  { %p2581_p4 = scmp.ne.s32.totalorder %s3193_s2, %s2580_s22  ;;  %p2584_p5 = scmp.lt.u32.totalorder %s2580_s22, %s3193_s2 }
  0x4c   :  { %p2586_p6 = pnand %p2584_p5, %p2581_p4 }
  0x4e   :  { %2589 = shalt.err (!%p2586_p6)
}
  0x4f   :  { %s2590_s24 = scalar_lea.vmem %s51_s11, 128  ;;  %p2595_p8 = scmp.lt.s32.totalorder %s51_s11, %s51_s11 }
  0x50   :  { %p2591_p7 = scmp.ne.s32.totalorder %s51_s11, %s2590_s24  ;;  %p2596_p9 = scmp.lt.s32.totalorder %s2590_s24, %s2590_s24 }
  0x52   :  { %p2597_p10 = por %p2596_p9, %p2595_p8 }
  0x54   :  { %p2598_p11 = pnand %p2597_p10, %p2591_p7 }
  0x56   :  { %2601 = shalt.err (!%p2598_p11)
}
  0x57   :  { %53 = dma.hbm_to_vmem [thread:$0]  %s3193_s2, 128, %s51_s11, [#allocation7]  }
  0x58   :  { %s2733_s29 = smov [#allocation11]   ;;  %s2734_s12 = smov [#allocation14]  }
  0x59   :  { %s69_s30 = sshll.u32 %s2733_s29, 4  ;;  %s94_s13 = sshll.u32 %s2734_s12, 4  ;;  %s70_s30 = int_to_ptr.vmem [resolvable:$true] %s69_s30  ;;  %s95_s13 = int_to_ptr.vmem [resolvable:$true] %s94_s13 }
  0x5a   :  { %s2602_s14 = scalar_lea.hbm %s3195_s4, 1280 }
  0x5b   :  { %p2603_p12 = scmp.ne.s32.totalorder %s3195_s4, %s2602_s14  ;;  %p2606_p13 = scmp.lt.u32.totalorder %s2602_s14, %s3195_s4 }
  0x5d   :  { %p2608_p0 = pnand %p2606_p13, %p2603_p12 }
  0x5f   :  { %2611 = shalt.err (!%p2608_p0)
}
  0x60   :  { %s2612_s2 = scalar_lea.vmem %s70_s30, 1280  ;;  %p2617_p2 = scmp.lt.s32.totalorder %s70_s30, %s70_s30 }
  0x61   :  { %p2613_p1 = scmp.ne.s32.totalorder %s70_s30, %s2612_s2  ;;  %p2618_p3 = scmp.lt.s32.totalorder %s2612_s2, %s2612_s2 }
  0x63   :  { %p2619_p4 = por %p2618_p3, %p2617_p2 }
  0x65   :  { %p2620_p5 = pnand %p2619_p4, %p2613_p1 }
  0x67   :  { %2623 = shalt.err (!%p2620_p5)
}
  0x68   :  { %75 = dma.hbm_to_vmem [thread:$0]  %s3195_s4, 1280, %s70_s30, [#allocation10], %s2727_s19, %s2727_s19, %s2728_s20  }
  0x69   :  { %s2624_s22 = scalar_lea.hbm %s3197_s6, 256 }
  0x6a   :  { %p2625_p6 = scmp.ne.s32.totalorder %s3197_s6, %s2624_s22  ;;  %p2628_p7 = scmp.lt.u32.totalorder %s2624_s22, %s3197_s6 }
  0x6c   :  { %p2630_p8 = pnand %p2628_p7, %p2625_p6 }
  0x6e   :  { %2633 = shalt.err (!%p2630_p8)
}
  0x6f   :  { %s2634_s24 = scalar_lea.vmem %s95_s13, 256  ;;  %p2639_p10 = scmp.lt.s32.totalorder %s95_s13, %s95_s13 }
  0x70   :  { %p2635_p9 = scmp.ne.s32.totalorder %s95_s13, %s2634_s24  ;;  %p2640_p11 = scmp.lt.s32.totalorder %s2634_s24, %s2634_s24 }
  0x72   :  { %p2641_p12 = por %p2640_p11, %p2639_p10 }
  0x74   :  { %p2642_p13 = pnand %p2641_p12, %p2635_p9 }
  0x76   :  { %2645 = shalt.err (!%p2642_p13)
}
  0x77   :  { %s2735_s4 = smov 64   ;;  %s2736_s19 = smov 4  }
  0x78   :  { %100 = dma.hbm_to_vmem [thread:$0]  %s3197_s6, 256, %s95_s13, [#allocation13], %s2735_s4, %s2735_s4, %s2736_s19  }
  0x79   :  { %s2737_s28 = smov [#allocation15]   ;;  %s2646_s1 = scalar_lea.hbm %s3198_s7, 16 }
  0x7a   :  { %s110_s29 = sshll.u32 %s2737_s28, 4  ;;  %p2647_p0 = scmp.ne.s32.totalorder %s3198_s7, %s2646_s1  ;;  %s111_s29 = int_to_ptr.vmem [resolvable:$true] %s110_s29 }
  0x7b   :  { %p2650_p1 = scmp.lt.u32.totalorder %s2646_s1, %s3198_s7 }
  0x7d   :  { %p2652_p2 = pnand %p2650_p1, %p2647_p0 }
  0x7f   :  { %2655 = shalt.err (!%p2652_p2)
}
  0x80   :  { %s2656_s5 = scalar_lea.vmem %s111_s29, 16  ;;  %s2660_s6 = scalar_lea.vmem %s111_s29, 32 }
  0x81   :  { %p2657_p3 = scmp.ne.s32.totalorder %s111_s29, %s2656_s5  ;;  %p2661_p4 = scmp.lt.s32.totalorder %s111_s29, %s111_s29 }
  0x82   :  { %p2662_p5 = scmp.lt.s32.totalorder %s2660_s6, %s2656_s5 }
  0x84   :  { %p2663_p6 = por %p2662_p5, %p2661_p4 }
  0x86   :  { %p2664_p7 = pnand %p2663_p6, %p2657_p3 }
  0x88   :  { %2667 = shalt.err (!%p2664_p7)
}
  0x89   :  { %113 = dma.hbm_to_vmem [thread:$0]  %s3198_s7, 16, %s111_s29, [#allocation16]  }
  0x8a   :  { %2712 = dma.done.wait [#allocation4], 128  }
  0x8b   :  { %2713 = vsyncadd [#allocation4], 4294967168 }
  0x8c   :  { %2714 = dma.done.wait [#allocation7], 1152  }
  0x8d   :  { %2715 = vsyncadd [#allocation7], 4294966144 }
  0x8e   :  { %2716 = dma.done.wait [#allocation10], 1408  }
  0x8f   :  { %2717 = vsyncadd [#allocation10], 4294965888 }
  0x90   :  { %2718 = dma.done.wait [#allocation13], 272  }
  0x91   :  { %2719 = vsyncadd [#allocation13], 4294967024 }
  0x92   :  { %2720 = dma.done.wait [#allocation16], 16  }
  0x93   :  { %2721 = vsyncadd [#allocation16], 4294967280  ;;  %v156_v0 = vlaneseq  ;;  %v2738_v2 = vmov 0.0|0.0   ;;  %v154_v5 = vld [vmem:[#allocation8] sm:$0xff]  ;;  %vm2739_vm0 = vmmov 0   ;;  %v2740_v8 = vmov 0.0  }
  0x94   :  { %2379 = vmatprep.subr.bf16.mxu0 %v2738_v2  ;;  %2385 = vmatprep.subr.bf16.mxu1 %v2738_v2  ;;  %v2741_v21 = vmov 0   ;;  %v2943_v31 = vld [vmem:[#allocation6] sm:$0xff]  ;;  %vm308_vm1 = vcmask 261120   ;;  %v2948_v35 = vld [vmem:[#allocation6 + $0x8] sm:$0xff]  ;;  %v148_v45 = vld [vmem:[#allocation6 + $0x10] sm:$0xff]  ;;  %vm959_vm2 = vcmask 1041409  }
  0x95   :  { %v2901_v1 = vshrl.u32 %v156_v0, 7  ;;  %2228 = vmatprep.mubr.msk.f32.mxu0 %vm2739_vm0, %v2740_v8  ;;  %2239 = vmatprep.mubr.msk.f32.mxu1 %vm2739_vm0, %v2740_v8  ;;  %v2961_v49 = vld [vmem:[#allocation6 + $0x18] sm:$0xff]  ;;  %v2972_v59 = vld [vmem:[#allocation6 + $0x20] sm:$0xff]  ;;  %v2977_v63 = vld [vmem:[#allocation6 + $0x28] sm:$0xff]  ;;  %vm961_vm3 = vcmask 1042434   ;;  %vm963_vm4 = vcmask 1043459  }
  0x96   :  { %2463 = vset.pattern.permute.xlu1 %v2741_v21  ;;  %2462 = vset.pattern.permute.xlu0 %v2741_v21  ;;  %v2988_v21 = vld [vmem:[#allocation6 + $0x30] sm:$0xff]  ;;  %vm965_vm5 = vcmask 1044484   ;;  %vm967_vm6 = vcmask 1045509   ;;  %vm969_vm7 = vcmask 1046534   ;;  %vm971_vm8 = vcmask 1047559   ;;  %s2742_s7 = smov 48  }
  0x97   :  { %v2906_v3 = vsub.s32 1, %v2901_v1  ;;  %v2909_v4 = vsub.s32 0, %v2901_v1  ;;  %v2918_v9 = vsub.s32 2, %v2901_v1  ;;  %v2922_v11 = vsub.s32 3, %v2901_v1  ;;  %s2743_s2 = smov 32   ;;  %s2744_s11 = smov [#allocation18]  }
  0x98   :  { %v2926_v13 = vsub.s32 4, %v2901_v1  ;;  %v2930_v15 = vsub.s32 5, %v2901_v1  ;;  %v2934_v17 = vsub.s32 6, %v2901_v1  ;;  %v2938_v19 = vsub.s32 7, %v2901_v1  ;;  %s2108_s17 = sshll.u32 %s2744_s11, 4  ;;  %s2109_s17 = int_to_ptr.vmem [resolvable:$true] %s2108_s17 }
  0x99   :  { %v178_v6 = vrot.slane %v154_v5, %v2906_v3  ;;  %v159_v7 = vrot.slane %v154_v5, %v2909_v4  ;;  %v197_v10 = vrot.slane %v154_v5, %v2918_v9  ;;  %v216_v12 = vrot.slane %v154_v5, %v2922_v11  ;;  %s2668_s18 = scalar_lea.vmem %s2109_s17, 128  ;;  %p2673_p9 = scmp.lt.s32.totalorder %s2109_s17, %s2109_s17 }
  0x9a   :  { %v235_v14 = vrot.slane %v154_v5, %v2926_v13  ;;  %v254_v16 = vrot.slane %v154_v5, %v2930_v15  ;;  %v273_v18 = vrot.slane %v154_v5, %v2934_v17  ;;  %v292_v20 = vrot.slane %v154_v5, %v2938_v19  ;;  %p2669_p8 = scmp.ne.s32.totalorder %s2109_s17, %s2668_s18  ;;  %p2674_p10 = scmp.lt.s32.totalorder %s2668_s18, %s2668_s18 }
  0x9b   :  { %180 = vbcast.lane.b32.xlu1 %v178_v6, 256  ;;  %161 = vbcast.lane.b32.xlu0 %v159_v7, 256  ;;  %vm974_vm9 = vcmask 64512   ;;  %vm1834_vm10 = vcmask 392192   ;;  %vm1853_vm11 = vcmask 654336   ;;  %vm1962_vm12 = vcmask 257024  }
  0x9c   :  { %vm2013_vm13 = vcmask 523264   ;;  %vm2015_vm14 = vcmask 785408   ;;  %vm2017_vm15 = vcmask 850944   ;;  %p2675_p11 = por %p2674_p10, %p2673_p9 }
  0x9e   :  { %p2676_p12 = pnand %p2675_p11, %p2669_p8 }
  0x9f   :  { %184 = vbcast.lane.b32.xlu1 %v178_v6, 264  ;;  %165 = vbcast.lane.b32.xlu0 %v159_v7, 264 }
  0xa3   :  { %173 = vbcast.lane.b32.xlu1 %v159_v7, 280  ;;  %169 = vbcast.lane.b32.xlu0 %v159_v7, 272 }
  0xa7   :  { %192 = vbcast.lane.b32.xlu1 %v178_v6, 280  ;;  %188 = vbcast.lane.b32.xlu0 %v178_v6, 272 }
  0xab   :  { %203 = vbcast.lane.b32.xlu1 %v197_v10, 264  ;;  %199 = vbcast.lane.b32.xlu0 %v197_v10, 256 }
  0xaf   :  { %222 = vbcast.lane.b32.xlu1 %v216_v12, 264  ;;  %218 = vbcast.lane.b32.xlu0 %v216_v12, 256 }
  0xb3   :  { %211 = vbcast.lane.b32.xlu1 %v197_v10, 280  ;;  %207 = vbcast.lane.b32.xlu0 %v197_v10, 272 }
  0xb7   :  { %230 = vbcast.lane.b32.xlu1 %v216_v12, 280  ;;  %226 = vbcast.lane.b32.xlu0 %v216_v12, 272 }
  0xbb   :  { %241 = vbcast.lane.b32.xlu1 %v235_v14, 264  ;;  %237 = vbcast.lane.b32.xlu0 %v235_v14, 256 }
  0xbf   :  { %260 = vbcast.lane.b32.xlu1 %v254_v16, 264  ;;  %256 = vbcast.lane.b32.xlu0 %v254_v16, 256 }
  0xc3   :  { %249 = vbcast.lane.b32.xlu1 %v235_v14, 280  ;;  %245 = vbcast.lane.b32.xlu0 %v235_v14, 272 }
  0xc7   :  { %268 = vbcast.lane.b32.xlu1 %v254_v16, 280  ;;  %264 = vbcast.lane.b32.xlu0 %v254_v16, 272 }
  0xcb   :  { %279 = vbcast.lane.b32.xlu1 %v273_v18, 264  ;;  %275 = vbcast.lane.b32.xlu0 %v273_v18, 256 }
  0xcf   :  { %298 = vbcast.lane.b32.xlu1 %v292_v20, 264  ;;  %294 = vbcast.lane.b32.xlu0 %v292_v20, 256 }
  0xd3   :  { %287 = vbcast.lane.b32.xlu1 %v273_v18, 280  ;;  %283 = vbcast.lane.b32.xlu0 %v273_v18, 272 }
  0xd7   :  { %306 = vbcast.lane.b32.xlu1 %v292_v20, 280  ;;  %302 = vbcast.lane.b32.xlu0 %v292_v20, 272 }
 0x10d   :  { %v181_v22 = vpop.permute.xlu1 %180  ;;  %v162_v23 = vpop.permute.xlu0 %161 }
 0x111   :  { %v185_v24 = vpop.permute.xlu1 %184  ;;  %v166_v25 = vpop.permute.xlu0 %165 }
 0x112   :  { %v2386_v26 = vpack.c.bf16 %v185_v24, %v181_v22  ;;  %v2380_v27 = vpack.c.bf16 %v166_v25, %v162_v23  ;;  %v2993_v25 = vld [vmem:[#allocation6 + $0x38] sm:$0xff] }
 0x114   :  { %2381 = vmatpush3.bf16.msra.mxu0 %v2380_v27  ;;  %2387 = vmatpush3.bf16.msra.mxu1 %v2386_v26 }
 0x115   :  { %v174_v28 = vpop.permute.xlu1 %173  ;;  %v170_v29 = vpop.permute.xlu0 %169  ;;  %2382 = vmatprep.subr.bf16.mxu0 %v2738_v2  ;;  %2388 = vmatprep.subr.bf16.mxu1 %v2738_v2 }
 0x116   :  { %v2383_v30 = vpack.c.bf16 %v174_v28, %v170_v29 }
 0x118   :  { %2384 = vmatpush3.bf16.msra.mxu0 %v2383_v30 }
 0x119   :  { %v193_v32 = vpop.permute.xlu1 %192  ;;  %v189_v33 = vpop.permute.xlu0 %188  ;;  %2391 = vmatprep.subr.bf16.mxu0 %v2738_v2 }
 0x11a   :  { %v2389_v34 = vpack.c.bf16 %v193_v32, %v189_v33 }
 0x11b   :  { %2229 = vmatmul.mubr.msk.f32.vlgmr.msra.gmra.mrb[0].mxu0 %vm308_vm1, %v2943_v31 }
 0x11c   :  { %2390 = vmatpush3.bf16.msra.mxu1 %v2389_v34  ;;  %2250 = vmatprep.mubr.msk.f32.mxu0 %vm2739_vm0, %v2740_v8 }
 0x11d   :  { %v204_v36 = vpop.permute.xlu1 %203  ;;  %v200_v37 = vpop.permute.xlu0 %199  ;;  %2397 = vmatprep.subr.bf16.mxu1 %v2738_v2 }
 0x11e   :  { %v2392_v38 = vpack.c.bf16 %v204_v36, %v200_v37 }
 0x11f   :  { %2240 = vmatmul.mubr.msk.f32.vlgmr.msra.gmra.mrb[0].mxu1 %vm308_vm1, %v2948_v35 }
 0x120   :  { %2393 = vmatpush3.bf16.msra.mxu0 %v2392_v38  ;;  %2261 = vmatprep.mubr.msk.f32.mxu1 %vm2739_vm0, %v2740_v8 }
 0x121   :  { %v223_v39 = vpop.permute.xlu1 %222  ;;  %v219_v40 = vpop.permute.xlu0 %218  ;;  %2394 = vmatprep.subr.bf16.mxu0 %v2738_v2 }
 0x122   :  { %v2398_v41 = vpack.c.bf16 %v223_v39, %v219_v40 }
 0x124   :  { %2399 = vmatpush3.bf16.msra.mxu1 %v2398_v41 }
 0x125   :  { %v212_v42 = vpop.permute.xlu1 %211  ;;  %v208_v43 = vpop.permute.xlu0 %207  ;;  %2400 = vmatprep.subr.bf16.mxu1 %v2738_v2 }
 0x126   :  { %v2395_v44 = vpack.c.bf16 %v212_v42, %v208_v43  ;;  %v3021_v43 = vand.u32 127, %v156_v0 }
 0x128   :  { %2396 = vmatpush3.bf16.msra.mxu0 %v2395_v44 }
 0x129   :  { %v231_v46 = vpop.permute.xlu1 %230  ;;  %v227_v47 = vpop.permute.xlu0 %226  ;;  %2403 = vmatprep.subr.bf16.mxu0 %v2738_v2 }
 0x12a   :  { %v2401_v48 = vpack.c.bf16 %v231_v46, %v227_v47 }
 0x12b   :  { %2251 = vmatmul.mubr.msk.f32.vlgmr.msra.gmra.mrb[2].mxu0 %vm308_vm1, %v148_v45 }
 0x12c   :  { %2402 = vmatpush3.bf16.msra.mxu1 %v2401_v48  ;;  %2272 = vmatprep.mubr.msk.f32.mxu0 %vm2739_vm0, %v2740_v8 }
 0x12d   :  { %v242_v50 = vpop.permute.xlu1 %241  ;;  %v238_v51 = vpop.permute.xlu0 %237  ;;  %2409 = vmatprep.subr.bf16.mxu1 %v2738_v2 }
 0x12e   :  { %v2404_v52 = vpack.c.bf16 %v242_v50, %v238_v51 }
 0x12f   :  { %2262 = vmatmul.mubr.msk.f32.vlgmr.msra.gmra.mrb[2].mxu1 %vm308_vm1, %v2961_v49 }
 0x130   :  { %2405 = vmatpush3.bf16.msra.mxu0 %v2404_v52  ;;  %2283 = vmatprep.mubr.msk.f32.mxu1 %vm2739_vm0, %v2740_v8 }
 0x131   :  { %v261_v53 = vpop.permute.xlu1 %260  ;;  %v257_v54 = vpop.permute.xlu0 %256  ;;  %2406 = vmatprep.subr.bf16.mxu0 %v2738_v2 }
 0x132   :  { %v2410_v55 = vpack.c.bf16 %v261_v53, %v257_v54 }
 0x134   :  { %2411 = vmatpush3.bf16.msra.mxu1 %v2410_v55 }
 0x135   :  { %v250_v56 = vpop.permute.xlu1 %249  ;;  %v246_v57 = vpop.permute.xlu0 %245  ;;  %2412 = vmatprep.subr.bf16.mxu1 %v2738_v2 }
 0x136   :  { %v2407_v58 = vpack.c.bf16 %v250_v56, %v246_v57 }
 0x138   :  { %2408 = vmatpush3.bf16.msra.mxu0 %v2407_v58 }
 0x139   :  { %v269_v60 = vpop.permute.xlu1 %268  ;;  %v265_v61 = vpop.permute.xlu0 %264  ;;  %2415 = vmatprep.subr.bf16.mxu0 %v2738_v2 }
 0x13a   :  { %v2413_v62 = vpack.c.bf16 %v269_v60, %v265_v61 }
 0x13b   :  { %2273 = vmatmul.mubr.msk.f32.vlgmr.msra.gmra.mrb[4].mxu0 %vm308_vm1, %v2972_v59 }
 0x13c   :  { %2414 = vmatpush3.bf16.msra.mxu1 %v2413_v62  ;;  %2294 = vmatprep.mubr.msk.f32.mxu0 %vm2739_vm0, %v2740_v8 }
 0x13d   :  { %v280_v5 = vpop.permute.xlu1 %279  ;;  %v276_v6 = vpop.permute.xlu0 %275  ;;  %2421 = vmatprep.subr.bf16.mxu1 %v2738_v2 }
 0x13e   :  { %v2416_v7 = vpack.c.bf16 %v280_v5, %v276_v6 }
 0x13f   :  { %2284 = vmatmul.mubr.msk.f32.vlgmr.msra.gmra.mrb[4].mxu1 %vm308_vm1, %v2977_v63 }
 0x140   :  { %2417 = vmatpush3.bf16.msra.mxu0 %v2416_v7  ;;  %2305 = vmatprep.mubr.msk.f32.mxu1 %vm2739_vm0, %v2740_v8 }
 0x141   :  { %v299_v10 = vpop.permute.xlu1 %298  ;;  %v295_v12 = vpop.permute.xlu0 %294  ;;  %2418 = vmatprep.subr.bf16.mxu0 %v2738_v2 }
 0x142   :  { %v2422_v14 = vpack.c.bf16 %v299_v10, %v295_v12 }
 0x144   :  { %2423 = vmatpush3.bf16.msra.mxu1 %v2422_v14 }
 0x145   :  { %v288_v16 = vpop.permute.xlu1 %287  ;;  %v284_v18 = vpop.permute.xlu0 %283  ;;  %2424 = vmatprep.subr.bf16.mxu1 %v2738_v2 }
 0x146   :  { %v2419_v20 = vpack.c.bf16 %v288_v16, %v284_v18 }
 0x148   :  { %2420 = vmatpush3.bf16.msra.mxu0 %v2419_v20 }
 0x149   :  { %v307_v22 = vpop.permute.xlu1 %306  ;;  %v303_v23 = vpop.permute.xlu0 %302  ;;  %2318 = vmatprep.subr.mxu0 %v2740_v8 }
 0x14a   :  { %v2425_v24 = vpack.c.bf16 %v307_v22, %v303_v23 }
 0x14b   :  { %2295 = vmatmul.mubr.msk.f32.vlgmr.msra.gmra.mrb[6].mxu0 %vm308_vm1, %v2988_v21 }
 0x14c   :  { %2426 = vmatpush3.bf16.msra.mxu1 %v2425_v24  ;;  %2319 = vmatpush3.msra.mxu0 %v148_v45  ;;  %v3025_v45 = vsub.s32 %v3021_v43, %v2901_v1 }
 0x14d   :  { %2308 = vmatprep.subr.mxu1 %v2740_v8  ;;  %2320 = vmatprep.mubr.msk.f32.mxu0 %vm2739_vm0, %v2740_v8 }
 0x14e   :  { %2328 = vmatprep.subr.mxu0 %v2740_v8 }
 0x14f   :  { %2306 = vmatmul.mubr.msk.f32.vlgmr.msra.gmra.mrb[6].mxu1 %vm308_vm1, %v2993_v25 }
 0x150   :  { %2309 = vmatpush3.msra.mxu1 %v2943_v31  ;;  %2310 = vmatprep.mubr.msk.f32.mxu1 %vm2739_vm0, %v2740_v8 }
 0x151   :  { %2313 = vmatprep.subr.mxu1 %v2740_v8 }
 0x1ee   :  { %v3005_v26 = vpop.f32.mrb[0].mxu0 }
 0x1ef   :  { %902 = vperm.xlu0 %2462, %v3005_v26   ;;  %v2230_v27 = vpop.f32.mrb[1].mxu0 }
 0x1f2   :  { %v451_v28 = vpop.f32.mrb[0].mxu1 }
 0x1f3   :  { %905 = vperm.xlu1 %2463, %v451_v28   ;;  %v2241_v29 = vpop.f32.mrb[1].mxu1 }
 0x1fe   :  { %v524_v30 = vpop.f32.mrb[2].mxu0 }
 0x1ff   :  { %908 = vperm.xlu1 %2463, %v524_v30   ;;  %v2252_v32 = vpop.f32.mrb[3].mxu0 }
 0x202   :  { %v597_v33 = vpop.f32.mrb[2].mxu1 }
 0x203   :  { %911 = vperm.xlu0 %2462, %v597_v33   ;;  %v2263_v34 = vpop.f32.mrb[3].mxu1 }
 0x20e   :  { %v3008_v31 = vpop.f32.mrb[4].mxu0 }
 0x20f   :  { %914 = vperm.xlu1 %2463, %v3008_v31   ;;  %v2274_v36 = vpop.f32.mrb[5].mxu0 }
 0x212   :  { %v3011_v37 = vpop.f32.mrb[4].mxu1 }
 0x213   :  { %917 = vperm.xlu0 %2462, %v3011_v37   ;;  %v2285_v38 = vpop.f32.mrb[5].mxu1 }
 0x21e   :  { %v3014_v39 = vpop.f32.mrb[6].mxu0 }
 0x21f   :  { %920 = vperm.xlu1 %2463, %v3014_v39   ;;  %v2296_v40 = vpop.f32.mrb[7].mxu0 }
 0x222   :  { %v3017_v41 = vpop.f32.mrb[6].mxu1 }
 0x223   :  { %v2307_v42 = vpop.f32.mrb[7].mxu1  ;;  %923 = vperm.xlu0 %2462, %v3017_v41  }
 0x26e   :  { %v903_v46 = vpop.permute.xlu0 %902 }
 0x26f   :  { %v930_v50 = vrot.slane %v903_v46, %v3025_v45 }
 0x272   :  { %v906_v44 = vpop.permute.xlu1 %905 }
 0x273   :  { %v934_v48 = vrot.slane %v906_v44, %v3025_v45 }
 0x275   :  { %v960_v53 = vsel %vm959_vm2, %v934_v48, %v930_v50 }
 0x27e   :  { %v909_v47 = vpop.permute.xlu1 %908 }
 0x27f   :  { %v938_v51 = vrot.slane %v909_v47, %v3025_v45 }
 0x281   :  { %v962_v55 = vsel %vm961_vm3, %v938_v51, %v960_v53 }
 0x282   :  { %v912_v52 = vpop.permute.xlu0 %911 }
 0x283   :  { %v942_v54 = vrot.slane %v912_v52, %v3025_v45 }
 0x285   :  { %v964_v60 = vsel %vm963_vm4, %v942_v54, %v962_v55 }
 0x28e   :  { %v915_v0 = vpop.permute.xlu1 %914 }
 0x28f   :  { %v946_v57 = vrot.slane %v915_v0, %v3025_v45 }
 0x291   :  { %v966_v5 = vsel %vm965_vm5, %v946_v57, %v964_v60 }
 0x292   :  { %v918_v56 = vpop.permute.xlu0 %917 }
 0x293   :  { %v950_v61 = vrot.slane %v918_v56, %v3025_v45 }
 0x295   :  { %v968_v7 = vsel %vm967_vm6, %v950_v61, %v966_v5 }
 0x29e   :  { %v921_v58 = vpop.permute.xlu1 %920 }
 0x29f   :  { %v954_v62 = vrot.slane %v921_v58, %v3025_v45 }
 0x2a1   :  { %v970_v12 = vsel %vm969_vm7, %v954_v62, %v968_v7 }
 0x2a2   :  { %v924_v6 = vpop.permute.xlu0 %923 }
 0x2a3   :  { %v958_v10 = vrot.slane %v924_v6, %v3025_v45 }
 0x2a5   :  { %v972_v14 = vsel %vm971_vm8, %v958_v10, %v970_v12 }
 0x2a6   :  { %v975_v16 = vsel %vm974_vm9, %v972_v14, -inf }
 0x2a7   :  { %976 = vmax.xlane.f32.xlu1 %v975_v16 }
 0x334   :  { %v977_v18 = vpop.xlane.xlu1 %976 }
 0x335   :  { %v982_v20 = vrot.slane %v977_v18, %v2909_v4  ;;  %v986_v22 = vrot.slane %v977_v18, %v2906_v3  ;;  %v990_v23 = vrot.slane %v977_v18, %v2918_v9  ;;  %v994_v32 = vrot.slane %v977_v18, %v2922_v11 }
 0x336   :  { %v998_v38 = vrot.slane %v977_v18, %v2926_v13  ;;  %v1002_v44 = vrot.slane %v977_v18, %v2930_v15 }
 0x337   :  { %v1019_v24 = vsub.f32 %v3005_v26, %v982_v20  ;;  %v1020_v27 = vsub.f32 %v451_v28, %v986_v22  ;;  %v1021_v34 = vsub.f32 %v524_v30, %v990_v23  ;;  %v1022_v40 = vsub.f32 %v597_v33, %v994_v32 }
 0x338   :  { %v1023_v46 = vsub.f32 %v3008_v31, %v998_v38  ;;  %v1006_v26 = vrot.slane %v977_v18, %v2934_v17  ;;  %v1024_v28 = vsub.f32 %v3011_v37, %v1002_v44  ;;  %v1010_v33 = vrot.slane %v977_v18, %v2938_v19 }
 0x339   :  { %v1027_v29 = vmul.f32 1.442695, %v1019_v24  ;;  %v1029_v36 = vmul.f32 1.442695, %v1020_v27  ;;  %v1031_v42 = vmul.f32 1.442695, %v1021_v34 }
 0x33a   :  { %v1033_v47 = vmul.f32 1.442695, %v1022_v40  ;;  %v1035_v30 = vmul.f32 1.442695, %v1023_v46  ;;  %v1025_v51 = vsub.f32 %v3014_v39, %v1006_v26  ;;  %v1037_v52 = vmul.f32 1.442695, %v1024_v28 }
 0x33b   :  { %2466 = vpow2.f32 %v1027_v29  ;;  %v1026_v31 = vsub.f32 %v3017_v41, %v1010_v33 }
 0x33c   :  { %2468 = vpow2.f32 %v1029_v36  ;;  %v1039_v0 = vmul.f32 1.442695, %v1025_v51 }
 0x33d   :  { %2470 = vpow2.f32 %v1031_v42  ;;  %v1041_v37 = vmul.f32 1.442695, %v1026_v31 }
 0x33e   :  { %2472 = vpow2.f32 %v1033_v47 }
 0x33f   :  { %2474 = vpow2.f32 %v1035_v30 }
 0x340   :  { %2476 = vpow2.f32 %v1037_v52 }
 0x341   :  { %2478 = vpow2.f32 %v1039_v0 }
 0x342   :  { %2480 = vpow2.f32 %v1041_v37 }
 0x345   :  { %v2467_v48 = vpop.eup %2466 }
 0x346   :  { %1052 = vperm.xlu0 %2462, %v2467_v48   ;;  %v2469_v50 = vpop.eup %2468 }
 0x347   :  { %v2471_v53 = vpop.eup %2470 }
 0x348   :  { %v2473_v54 = vpop.eup %2472 }
 0x349   :  { %v2475_v55 = vpop.eup %2474 }
 0x34a   :  { %1055 = vperm.xlu0 %2462, %v2469_v50   ;;  %v2477_v56 = vpop.eup %2476 }
 0x34b   :  { %v2479_v57 = vpop.eup %2478 }
 0x34c   :  { %v2481_v39 = vpop.eup %2480 }
 0x34e   :  { %1058 = vperm.xlu0 %2462, %v2471_v53  }
 0x352   :  { %1061 = vperm.xlu0 %2462, %v2473_v54  }
 0x356   :  { %1064 = vperm.xlu0 %2462, %v2475_v55  }
 0x35a   :  { %1067 = vperm.xlu0 %2462, %v2477_v56  }
 0x35e   :  { %1070 = vperm.xlu0 %2462, %v2479_v57  }
 0x362   :  { %1073 = vperm.xlu0 %2462, %v2481_v39  }
 0x3c5   :  { %v1053_v58 = vpop.permute.xlu0 %1052 }
 0x3c6   :  { %v1078_v10 = vrot.slane %v1053_v58, %v3025_v45 }
 0x3c9   :  { %v1056_v60 = vpop.permute.xlu0 %1055 }
 0x3ca   :  { %v1082_v6 = vrot.slane %v1056_v60, %v3025_v45 }
 0x3cc   :  { %v1107_v18 = vsel %vm959_vm2, %v1082_v6, %v1078_v10 }
 0x3cd   :  { %v1059_v61 = vpop.permute.xlu0 %1058 }
 0x3ce   :  { %v1086_v7 = vrot.slane %v1059_v61, %v3025_v45 }
 0x3d0   :  { %v1108_v22 = vsel %vm961_vm3, %v1086_v7, %v1107_v18  ;;  %v1836_v18 = vld [vmem:[#allocation11] sm:$0xff] }
 0x3d1   :  { %v1062_v62 = vpop.permute.xlu0 %1061 }
 0x3d2   :  { %v1090_v12 = vrot.slane %v1062_v62, %v3025_v45 }
 0x3d4   :  { %v1109_v24 = vsel %vm963_vm4, %v1090_v12, %v1108_v22  ;;  %v1838_v22 = vld [vmem:[#allocation11 + $0x10] sm:$0xff] }
 0x3d5   :  { %v1065_v41 = vpop.permute.xlu0 %1064 }
 0x3d6   :  { %v1094_v14 = vrot.slane %v1065_v41, %v3025_v45 }
 0x3d8   :  { %v1110_v27 = vsel %vm965_vm5, %v1094_v14, %v1109_v24  ;;  %v1839_v24 = vld [vmem:[#allocation11 + $0x18] sm:$0xff] }
 0x3d9   :  { %v1068_v5 = vpop.permute.xlu0 %1067 }
 0x3da   :  { %v1098_v20 = vrot.slane %v1068_v5, %v3025_v45 }
 0x3dc   :  { %v1111_v32 = vsel %vm967_vm6, %v1098_v20, %v1110_v27  ;;  %v1837_v20 = vld [vmem:[#allocation11 + $0x8] sm:$0xff]  ;;  %v2431_v27 = vpack.c.bf16 %v1839_v24, %v1838_v22 }
 0x3dd   :  { %v1071_v16 = vpop.permute.xlu0 %1070 }
 0x3de   :  { %v1102_v23 = vrot.slane %v1071_v16, %v3025_v45 }
 0x3e0   :  { %v1112_v36 = vsel %vm969_vm7, %v1102_v23, %v1111_v32  ;;  %v2428_v23 = vpack.c.bf16 %v1837_v20, %v1836_v18  ;;  %v1841_v32 = vld [vmem:[#allocation11 + $0x28] sm:$0xff] }
 0x3e1   :  { %v1074_v29 = vpop.permute.xlu0 %1073 }
 0x3e2   :  { %v1106_v34 = vrot.slane %v1074_v29, %v3025_v45  ;;  %v1840_v29 = vld [vmem:[#allocation11 + $0x20] sm:$0xff] }
 0x3e4   :  { %v1113_v38 = vsel %vm971_vm8, %v1106_v34, %v1112_v36  ;;  %v2434_v34 = vpack.c.bf16 %v1841_v32, %v1840_v29  ;;  %v1843_v36 = vld [vmem:[#allocation11 + $0x38] sm:$0xff] }
 0x3e5   :  { %v1115_v40 = vsel %vm974_vm9, %v1113_v38, 0.0  ;;  %v2465_v29 = vld [vmem:[#allocation14 + $0x8] sm:$0xff]  }
 0x3e6   :  { %1116 = vadd.xlane.f32.xlu0 %v1115_v40  ;;  %v1844_v40 = vld [vmem:[#allocation11 + $0x40] sm:$0xff] }
 0x473   :  { %v1117_v42 = vpop.xlane.xlu0 %1116 }
 0x474   :  { %2482 = vrcp.f32 %v1117_v42  ;;  %v1845_v42 = vld [vmem:[#allocation11 + $0x48] sm:$0xff] }
 0x47e   :  { %v2483_v44 = vpop.eup %2482 }
 0x47f   :  { %v1143_v46 = vrot.slane %v2483_v44, %v2930_v15  ;;  %v1123_v47 = vrot.slane %v2483_v44, %v2909_v4  ;;  %v1127_v30 = vrot.slane %v2483_v44, %v2906_v3  ;;  %v1131_v51 = vrot.slane %v2483_v44, %v2918_v9 }
 0x480   :  { %v1135_v31 = vrot.slane %v2483_v44, %v2922_v11  ;;  %v1139_v37 = vrot.slane %v2483_v44, %v2926_v13  ;;  %v1147_v4 = vrot.slane %v2483_v44, %v2934_v17  ;;  %v1151_v3 = vrot.slane %v2483_v44, %v2938_v19 }
 0x481   :  { %v1165_v26 = vmul.f32 %v2477_v56, %v1143_v46  ;;  %v1160_v28 = vmul.f32 %v2467_v48, %v1123_v47  ;;  %v1161_v33 = vmul.f32 %v2469_v50, %v1127_v30  ;;  %v1162_v52 = vmul.f32 %v2471_v53, %v1131_v51 }
 0x482   :  { %v1163_v0 = vmul.f32 %v2473_v54, %v1135_v31  ;;  %v1164_v15 = vmul.f32 %v2475_v55, %v1139_v37  ;;  %v1166_v48 = vmul.f32 %v2479_v57, %v1147_v4  ;;  %v1167_v50 = vmul.f32 %v2481_v39, %v1151_v3 }
 0x483   :  { %1570 = vperm.xlu0 %2462, %v1165_v26   ;;  %1170 = vperm.xlu1 %2463, %v1160_v28   ;;  %v1971_v9 = vadd.s32 4294967200, %v3021_v43  ;;  %v2440_v44 = vpack.c.bf16 %v1845_v42, %v1844_v40 }
 0x485   :  { %v3082_v11 = vsub.s32 %v1971_v9, %v2901_v1 }
 0x487   :  { %1250 = vperm.xlu1 %2463, %v1161_v33  }
 0x48b   :  { %1330 = vperm.xlu1 %2463, %v1162_v52  }
 0x48f   :  { %1410 = vperm.xlu1 %2463, %v1163_v0  }
 0x493   :  { %1490 = vperm.xlu1 %2463, %v1164_v15  }
 0x497   :  { %1650 = vperm.xlu1 %2463, %v1166_v48  }
 0x49b   :  { %1730 = vperm.xlu1 %2463, %v1167_v50  }
 0x502   :  { %v1171_v53 = vpop.permute.xlu1 %1170  ;;  %v1571_v60 = vpop.permute.xlu0 %1570 }
 0x503   :  { %v1175_v54 = vrot.slane %v1171_v53, %v3025_v45  ;;  %v1975_v17 = vrot.slane %v1171_v53, %v3082_v11  ;;  %v1995_v7 = vrot.slane %v1571_v60, %v3082_v11 }
 0x505   :  { %2311 = vmatmul.mubr.msk.f32.vlgmr.msra.gmra.mrb[8].mxu1 %vm974_vm9, %v1175_v54 }
 0x506   :  { %v1251_v13 = vpop.permute.xlu1 %1250  ;;  %2314 = vmatpush3.msra.mxu1 %v2948_v35  ;;  %2315 = vmatprep.mubr.msk.f32.mxu1 %vm2739_vm0, %v2740_v8 }
 0x507   :  { %v1255_v19 = vrot.slane %v1251_v13, %v3025_v45  ;;  %v1979_v43 = vrot.slane %v1251_v13, %v3082_v11  ;;  %2323 = vmatprep.subr.mxu1 %v2740_v8 }
 0x509   :  { %v2004_v1 = vsel %vm959_vm2, %v1979_v43, %v1975_v17  ;;  %2316 = vmatmul.mubr.msk.f32.vlgmr.msra.gmra.mrb[10].mxu1 %vm974_vm9, %v1255_v19 }
 0x50a   :  { %v1331_v55 = vpop.permute.xlu1 %1330  ;;  %2324 = vmatpush3.msra.mxu1 %v2961_v49  ;;  %2325 = vmatprep.mubr.msk.f32.mxu1 %vm2739_vm0, %v2740_v8 }
 0x50b   :  { %v1335_v35 = vrot.slane %v1331_v55, %v3025_v45  ;;  %v1983_v56 = vrot.slane %v1331_v55, %v3082_v11  ;;  %2333 = vmatprep.subr.mxu1 %v2740_v8 }
 0x50d   :  { %v2005_v57 = vsel %vm961_vm3, %v1983_v56, %v2004_v1  ;;  %2321 = vmatmul.mubr.msk.f32.vlgmr.msra.gmra.mrb[8].mxu0 %vm974_vm9, %v1335_v35 }
 0x50e   :  { %v1411_v39 = vpop.permute.xlu1 %1410  ;;  %2329 = vmatpush3.msra.mxu0 %v2972_v59  ;;  %2330 = vmatprep.mubr.msk.f32.mxu0 %vm2739_vm0, %v2740_v8  ;;  %v1575_v59 = vrot.slane %v1571_v60, %v3025_v45 }
 0x50f   :  { %v1415_v49 = vrot.slane %v1411_v39, %v3025_v45  ;;  %v1987_v58 = vrot.slane %v1411_v39, %v3082_v11  ;;  %2338 = vmatprep.subr.mxu0 %v2740_v8 }
 0x511   :  { %v2006_v61 = vsel %vm963_vm4, %v1987_v58, %v2005_v57  ;;  %2326 = vmatmul.mubr.msk.f32.vlgmr.msra.gmra.mrb[12].mxu1 %vm974_vm9, %v1415_v49  ;;  %v1808_v49 = vld [vmem:[#allocation3] sm:$0xff] }
 0x512   :  { %v1491_v62 = vpop.permute.xlu1 %1490  ;;  %2334 = vmatpush3.msra.mxu1 %v2977_v63  ;;  %2335 = vmatprep.mubr.msk.f32.mxu1 %vm2739_vm0, %v2740_v8 }
 0x513   :  { %v1495_v41 = vrot.slane %v1491_v62, %v3025_v45  ;;  %v1991_v5 = vrot.slane %v1491_v62, %v3082_v11  ;;  %2343 = vmatprep.subr.mxu1 %v2740_v8 }
 0x515   :  { %v2007_v6 = vsel %vm965_vm5, %v1991_v5, %v2006_v61  ;;  %2331 = vmatmul.mubr.msk.f32.vlgmr.msra.gmra.mrb[10].mxu0 %vm974_vm9, %v1495_v41  ;;  %2336 = vmatmul.mubr.msk.f32.vlgmr.msra.gmra.mrb[14].mxu1 %vm974_vm9, %v1575_v59  ;;  %v2141_v61 = vld [vmem:[#allocation12] ss:$0 sm:$0xff] }
 0x516   :  { %v1651_v63 = vpop.permute.xlu1 %1650  ;;  %2339 = vmatpush3.msra.mxu0 %v2988_v21  ;;  %2340 = vmatprep.mubr.msk.f32.mxu0 %vm2739_vm0, %v2740_v8  ;;  %v2008_v14 = vsel %vm967_vm6, %v1995_v7, %v2007_v6  ;;  %v155_v6 = vld [vmem:[#allocation9] sm:$0xff] }
 0x517   :  { %v1655_v10 = vrot.slane %v1651_v63, %v3025_v45  ;;  %v1999_v12 = vrot.slane %v1651_v63, %v3082_v11  ;;  %2344 = vmatpush3.msra.mxu1 %v2993_v25  ;;  %2345 = vmatprep.mubr.msk.f32.mxu1 %vm2739_vm0, %v2740_v8 }
 0x518   :  { %2427 = vmatprep.subr.bf16.mxu0 %v2738_v2  ;;  %2371 = vmatprep.subr.bf16.mxu1 %v2740_v8 }
 0x519   :  { %v3134_v21 = vsel %vm969_vm7, %v1999_v12, %v2008_v14  ;;  %2341 = vmatmul.mubr.msk.f32.vlgmr.msra.gmra.mrb[12].mxu0 %vm974_vm9, %v1655_v10 }
 0x51a   :  { %v3137_v16 = vpop.permute.xlu1 %1730  ;;  %2368 = vmatprep.mubr.msk.f32.mxu0 %vm2739_vm0, %v2740_v8  ;;  %2429 = vmatpush3.bf16.msra.mxu0 %v2428_v23 }
 0x51b   :  { %v1735_v25 = vrot.slane %v3137_v16, %v3025_v45  ;;  %2430 = vmatprep.subr.bf16.mxu0 %v2738_v2  ;;  %v1842_v45 = vld [vmem:[#allocation11 + $0x30] sm:$0xff] }
 0x51c   :  { %v2437_v38 = vpack.c.bf16 %v1843_v36, %v1842_v45 }
 0x51d   :  { %2346 = vmatmul.mubr.msk.f32.vlgmr.msra.gmra.mrb[16].mxu1 %vm974_vm9, %v1735_v25 }
 0x51e   :  { %2375 = vmatprep.mubr.msk.bf16.mxu1 %vm2739_vm0, %v2740_v8  ;;  %2432 = vmatpush3.bf16.msra.mxu0 %v2431_v27  ;;  %v2464_v27 = vld [vmem:[#allocation14] sm:$0xff]  }
 0x51f   :  { %2433 = vmatprep.subr.bf16.mxu0 %v2738_v2  ;;  %2372 = vmatpush3.bf16.msra.mxu1 %v2464_v27 }
 0x520   :  { %2373 = vmatprep.subr.bf16.mxu1 %v2740_v8 }
 0x522   :  { %2435 = vmatpush3.bf16.msra.mxu0 %v2434_v34 }
 0x523   :  { %2436 = vmatprep.subr.bf16.mxu0 %v2738_v2  ;;  %2374 = vmatpush3.bf16.msra.mxu1 %v2465_v29 }
 0x526   :  { %2438 = vmatpush3.bf16.msra.mxu0 %v2437_v38  ;;  %v2003_v38 = vrot.slane %v3137_v16, %v3082_v11 }
 0x527   :  { %2439 = vmatprep.subr.bf16.mxu0 %v2738_v2 }
 0x52a   :  { %2441 = vmatpush3.bf16.msra.mxu0 %v2440_v44 }
 0x5d8   :  { %v1244_v46 = vpop.f32.mrb[8].mxu1 }
 0x5d9   :  { %v2312_v47 = vpop.f32.mrb[9].mxu1 }
 0x5dc   :  { %v1324_v26 = vpop.f32.mrb[10].mxu1 }
 0x5dd   :  { %v1817_v28 = vrot.slane %v1324_v26, 7  ;;  %v2317_v30 = vpop.f32.mrb[11].mxu1 }
 0x5df   :  { %v1818_v33 = vsel %vm959_vm2, %v1817_v28, %v1244_v46  ;;  %v2010_v46 = vsel %vm971_vm8, %v2003_v38, %v3134_v21 }
 0x5e0   :  { %v1404_v51 = vpop.f32.mrb[8].mxu0 }
 0x5e1   :  { %v1819_v52 = vrot.slane %v1404_v51, 6  ;;  %v2322_v31 = vpop.f32.mrb[9].mxu0 }
 0x5e3   :  { %v1820_v0 = vsel %vm961_vm3, %v1819_v52, %v1818_v33 }
 0x5e4   :  { %v1484_v37 = vpop.f32.mrb[12].mxu1 }
 0x5e5   :  { %v1821_v15 = vrot.slane %v1484_v37, 5  ;;  %v2327_v4 = vpop.f32.mrb[13].mxu1 }
 0x5e7   :  { %v1822_v48 = vsel %vm963_vm4, %v1821_v15, %v1820_v0 }
 0x5e8   :  { %v1564_v3 = vpop.f32.mrb[10].mxu0  ;;  %v1644_v2 = vpop.f32.mrb[14].mxu1 }
 0x5e9   :  { %v1823_v50 = vrot.slane %v1564_v3, 4  ;;  %v1825_v9 = vrot.slane %v1644_v2, 3  ;;  %v2332_v53 = vpop.f32.mrb[11].mxu0  ;;  %v2337_v54 = vpop.f32.mrb[15].mxu1 }
 0x5eb   :  { %v1824_v13 = vsel %vm965_vm5, %v1823_v50, %v1822_v48 }
 0x5ec   :  { %v1826_v17 = vsel %vm967_vm6, %v1825_v9, %v1824_v13  ;;  %v1724_v19 = vpop.f32.mrb[12].mxu0 }
 0x5ed   :  { %v1827_v43 = vrot.slane %v1724_v19, 2  ;;  %v2342_v1 = vpop.f32.mrb[13].mxu0 }
 0x5ef   :  { %v1828_v55 = vsel %vm969_vm7, %v1827_v43, %v1826_v17 }
 0x5f0   :  { %v1804_v35 = vpop.f32.mrb[16].mxu1 }
 0x5f1   :  { %v1829_v56 = vrot.slane %v1804_v35, 1  ;;  %v2347_v57 = vpop.f32.mrb[17].mxu1 }
 0x5f3   :  { %v1830_v39 = vsel %vm971_vm8, %v1829_v56, %v1828_v55 }
 0x5f4   :  { %1831 = vrot.lane.b32.xlu1 %v1830_v39, %s2742_s7 }
 0x666   :  { %v1832_v58 = vpop.permute.xlu1 %1831 }
 0x667   :  { %v1835_v60 = vsel %vm1834_vm10, %v1808_v49, %v1832_v58 }
 0x668   :  { %2369 = vmatmul.mubr.msk.f32.vlgmr.msra.gmra.mrb[14].mxu0 %vm1853_vm11, %v1835_v60 }
 0x73b   :  { %v1923_v62 = vpop.f32.mrb[14].mxu0 }
 0x73c   :  { %v1924_v59 = vadd.f32 %v2141_v61, %v1923_v62  ;;  %v2370_v41 = vpop.f32.mrb[15].mxu0 }
 0x73e   :  { %2484 = vtanh.f32 %v1924_v59  ;;  %v2143_v7 = vmul.f32 -1.442695, %v1924_v59 }
 0x740   :  { %2486 = vpow2.f32 %v2143_v7 }
 0x748   :  { %v2485_v5 = vpop.eup %2484 }
 0x749   :  { %1940 = vrot.lane.b32.xlu1 %v2485_v5, %s2735_s4 }
 0x74a   :  { %v2487_v63 = vpop.eup %2486 }
 0x74b   :  { %v1930_v10 = vadd.f32 1.0, %v2487_v63 }
 0x74d   :  { %1935 = vrot.lane.b32.xlu1 %v155_v6, %s2743_s2  ;;  %2488 = vrcp.f32 %v1930_v10 }
 0x757   :  { %v2489_v12 = vpop.eup %2488 }
 0x7bb   :  { %v1941_v14 = vpop.permute.xlu1 %1940 }
 0x7bc   :  { %v1943_v25 = vmul.f32 %v2489_v12, %v1941_v14 }
 0x7be   :  { %1945 = vrot.lane.b32.xlu0 %v1943_v25, %s2743_s2 }
 0x7bf   :  { %v1936_v18 = vpop.permute.xlu1 %1935 }
 0x7c0   :  { %v1938_v20 = vmul.f32 %v2489_v12, %v1936_v18 }
 0x830   :  { %v1946_v22 = vpop.permute.xlu0 %1945 }
 0x831   :  { %v1948_v23 = vadd.f32 %v1946_v22, %v1938_v20 }
 0x833   :  { %2490 = vtanh.f32 %v1948_v23 }
 0x83d   :  { %v2491_v24 = vpop.eup %2490 }
 0x83e   :  { %1951 = vrot.lane.b32.xlu1 %v2491_v24, %s2735_s4 }
 0x8b0   :  { %v1952_v32 = vpop.permute.xlu1 %1951 }
 0x8b1   :  { %v1954_v34 = vmul.f32 %v2489_v12, %v1952_v32 }
 0x8b3   :  { %v2149_v45 = vpack.c.bf16 %v1954_v34, %v1954_v34  ;;  %1965 = vrot.lane.b32.xlu1 %v1954_v34, %s2743_s2 }
 0x8b5   :  { %1959 = vrot.lane.b32.xlu0 %v2149_v45, %s2743_s2 }
 0x8b9   :  { %1968 = vrot.lane.b32.xlu0 %v1830_v39, %s2735_s4 }
 0x925   :  { %v1966_v40 = vpop.permute.xlu1 %1965 }
 0x926   :  { %v2012_v8 = vsel %vm308_vm1, %v1966_v40, %v1948_v23 }
 0x927   :  { %v1960_v36 = vpop.permute.xlu0 %1959 }
 0x928   :  { %1963 = vst.msk [vmem:[#allocation2] sm:$0xf] %vm1962_vm12, %v1960_v36 }
 0x92b   :  { %v1969_v42 = vpop.permute.xlu0 %1968 }
 0x92c   :  { %v2014_v44 = vsel %vm2013_vm13, %v2012_v8, %v1969_v42 }
 0x92d   :  { %v2016_v47 = vsel %vm2015_vm14, %v2014_v44, %v2010_v46 }
 0x92e   :  { %v2018_v26 = vsel %vm2017_vm15, %v2016_v47, 0.0 }
 0x92f   :  { %v2020_v28 = vld [vmem:[#allocation2] sm:$0xf]  ;;  %2019 = vst [vmem:[#allocation18] sm:$0xff] %v2018_v26 }
 0x930   :  { %2376 = vmatmul.mubr.msk.bf16.vlgmr.msra.gmra.mrb[20].mxu1 %vm308_vm1, %v2020_v28 }
 0x931   :  { %2679 = shalt.err (!%p2676_p12)
}
 0x932   :  { %s2680_s23 = scalar_lea.hbm %s3200_s9, 128 }
 0x933   :  { %p2681_p13 = scmp.ne.s32.totalorder %s3200_s9, %s2680_s23  ;;  %p2684_p0 = scmp.lt.u32.totalorder %s2680_s23, %s3200_s9 }
 0x935   :  { %p2686_p1 = pnand %p2684_p0, %p2681_p13 }
 0x937   :  { %2689 = shalt.err (!%p2686_p1)
}
 0x938   :  { %2111 = dma.vmem_to_hbm [thread:$0]  %s2109_s17, 128, %s3200_s9, [#allocation19]   ;;  %v2145_v11 = vld [vmem:[#allocation15] ss:$0 sm:$0xff] }
 0x939   :  { %s2745_s20 = smov [#allocation17]  }
 0x93a   :  { %s2098_s0 = sshll.u32 %s2745_s20, 4  ;;  %s2099_s0 = int_to_ptr.vmem [resolvable:$true] %s2098_s0 }
 0x93b   :  { %s2690_s28 = scalar_lea.vmem %s2099_s0, 128  ;;  %p2695_p3 = scmp.lt.s32.totalorder %s2099_s0, %s2099_s0 }
 0x93c   :  { %p2691_p2 = scmp.ne.s32.totalorder %s2099_s0, %s2690_s28  ;;  %p2696_p4 = scmp.lt.s32.totalorder %s2690_s28, %s2690_s28 }
 0x93e   :  { %p2697_p5 = por %p2696_p4, %p2695_p3 }
 0x940   :  { %p2698_p6 = pnand %p2697_p5, %p2691_p2 }
 0xa03   :  { %v2082_v21 = vpop.f32.mrb[20].mxu1 }
 0xa04   :  { %v2083_v16 = vadd.f32 %v2145_v11, %v2082_v21  ;;  %v2377_v30 = vpop.f32.mrb[21].mxu1 }
 0xa05   :  { %v2085_v33 = vpop.f32.mrb[22].mxu1 }
 0xa06   :  { %2088 = vst [vmem:[#allocation17] sm:$0xff] %v2083_v16  ;;  %v2378_v51 = vpop.f32.mrb[23].mxu1 }
 0xa07   :  { %2701 = shalt.err (!%p2698_p6)
}
 0xa08   :  { %s2702_s9 = scalar_lea.hbm %s3199_s8, 128 }
 0xa09   :  { %p2703_p7 = scmp.ne.s32.totalorder %s3199_s8, %s2702_s9  ;;  %p2706_p8 = scmp.lt.u32.totalorder %s2702_s9, %s3199_s8 }
 0xa0b   :  { %p2708_p9 = pnand %p2706_p8, %p2703_p7 }
 0xa0d   :  { %2711 = shalt.err (!%p2708_p9)
}
 0xa0e   :  { %2101 = dma.vmem_to_hbm [thread:$0]  %s2099_s0, 128, %s3199_s8, [#allocation5]  }
 0xa0f   :  { %2722 = dma.done.wait [#allocation5], 128  }
 0xa10   :  { %2723 = vsyncadd [#allocation5], 4294967168 }
 0xa11   :  { %2724 = dma.done.wait [#allocation19], 128  }
 0xa12   :  { %2725 = vsyncadd [#allocation19], 4294967168 }
 0xa13   :  { %2118 = vsyncpa [#allocation4], 1 }
 0xa14   :  { %2119 = vsyncpa [#allocation7], 1 }
 0xa15   :  { %2120 = vsyncpa [#allocation10], 1 }
 0xa16   :  { %2121 = vsyncpa [#allocation13], 1 }
 0xa17   :  { %2122 = vsyncpa [#allocation16], 1 }
 0xa18   :  { %2123 = vsyncpa [#allocation5], 1 }
 0xa19   :  { %2124 = vsyncpa [#allocation19], 1 }

</bundles_post_ra>
